<compile_context>
chip_gen: v7x
topology: tpu7x:2x2x1
jax: 0.10.0
libtpu: 0.0.40
codegen_flags: <defaults>
</compile_context>

<pallas_src>
import math

import jax
import jax.numpy as jnp
from jax.experimental import pallas as pl
from jax.experimental.pallas import tpu as pltpu

EPS = 1e-5


def _default_vmem_limit():
    # Generation-aware scoped-VMEM budget with ~30% headroom for Mosaic
    # internal scratch (v5e/v6e: 128 MiB physical, v7x: 64 MiB per TC).
    try:
        cap = getattr(pltpu.get_tpu_info(), "vmem_capacity_bytes",
                      128 * 1024 * 1024)
    except Exception:  # e.g. not on TPU at import time
        cap = 64 * 1024 * 1024
    return int(cap * 7 // 10)


VMEM_LIMIT = _default_vmem_limit()
_HAS_BUFFERED = hasattr(pl, "Buffered")


def _layer_norm(x, g, b):
    mu = jnp.mean(x, axis=-1, keepdims=True)
    var = jnp.mean((x - mu) ** 2, axis=-1, keepdims=True)
    return (x - mu) * jax.lax.rsqrt(var + EPS) * g + b


def _ff_sublayer(x, g, b, w1, b1, w2, b2):
    # pre-norm residual feed-forward: x + W2(relu(W1(LN(x))))
    # bf16 matmul operands, f32 accumulation / residual stream.
    h = _layer_norm(x, g, b).astype(w1.dtype)
    h = jnp.maximum(
        jnp.dot(h, w1, preferred_element_type=jnp.float32) + b1, 0.0)
    return x + jnp.dot(h.astype(w2.dtype), w2,
                       preferred_element_type=jnp.float32) + b2


def encoder_kernel(
    x_ref,        # (S, D) f32  embedded input rows for this batch element
    pbias_ref,    # (1, 1, S) f32 additive key-padding bias (0 or -1e9)
    ff1_g_ref, ff1_b_ref, ff1_w1_ref, ff1_b1_ref, ff1_w2_ref, ff1_b2_ref,
    at_g_ref, at_b_ref, wq_ref, bq_ref, wk_ref, bk_ref, wv_ref, bv_ref,
    wo_ref, bo_ref,
    ff2_g_ref, ff2_b_ref, ff2_w1_ref, ff2_b1_ref, ff2_w2_ref, ff2_b2_ref,
    fin_g_ref, fin_b_ref,
    y_ref,        # (S, D) bf16 encoder output (post final LayerNorm)
):
    x = x_ref[...]
    d = x.shape[-1]
    cdt = wq_ref.dtype            # bf16 compute dtype for MXU operands

    # --- pre feed-forward sublayer ---
    h = _ff_sublayer(x, ff1_g_ref[...], ff1_b_ref[...],
                     ff1_w1_ref[...], ff1_b1_ref[...],
                     ff1_w2_ref[...], ff1_b2_ref[...])

    # --- Kule attention sublayer: norm -> 1-head MHA -> dropout (no residual) ---
    xn = _layer_norm(h, at_g_ref[...], at_b_ref[...]).astype(cdt)
    scale = 1.0 / math.sqrt(d)
    q = ((jnp.dot(xn, wq_ref[...], preferred_element_type=jnp.float32)
          + bq_ref[...]) * scale).astype(cdt)
    k = (jnp.dot(xn, wk_ref[...], preferred_element_type=jnp.float32)
         + bk_ref[...]).astype(cdt)
    v = (jnp.dot(xn, wv_ref[...], preferred_element_type=jnp.float32)
         + bv_ref[...]).astype(cdt)

    # (S, S) attention fully in registers: contract last dims (no k.T),
    # f32 softmax, EUP reciprocal for the denominator.
    # TODO(synk): if production S stays < 128, pack multiple sequences per
    # score matmul for lane-dense MXU/VPU utilisation.
    scores = jax.lax.dot_general(
        q, k, (((1,), (1,)), ((), ())),
        preferred_element_type=jnp.float32)                  # (S, S)
    scores = scores + pbias_ref[0]                           # (1, S) broadcast
    scores = scores - jnp.max(scores, axis=-1, keepdims=True)
    p = jnp.exp(scores)
    p = p * pl.reciprocal(jnp.sum(p, axis=-1, keepdims=True), approx=True)
    ctx = jnp.dot(p.astype(cdt), v,
                  preferred_element_type=jnp.float32)        # (S, D) f32

    a = jnp.dot(ctx.astype(cdt), wo_ref[...],
                preferred_element_type=jnp.float32) + bo_ref[...]

    # --- post feed-forward sublayer ---
    y = _ff_sublayer(a, ff2_g_ref[...], ff2_b_ref[...],
                     ff2_w1_ref[...], ff2_b1_ref[...],
                     ff2_w2_ref[...], ff2_b2_ref[...])

    # --- final encoder LayerNorm ---
    y = _layer_norm(y, fin_g_ref[...], fin_b_ref[...])
    y_ref[...] = y.astype(y_ref.dtype)


def projection_kernel(y_ref, emb_ref, pb_ref, out_ref):
    # y_ref: (TM, D) bf16, emb_ref: (TN, D) bf16, pb_ref: (1, TN) f32,
    # out_ref: (TM, TN) bf16.  Tied projection: contract D (last dim of both),
    # so the embedding table is never transposed.
    logits = jax.lax.dot_general(
        y_ref[...], emb_ref[...],
        dimension_numbers=(((1,), (1,)), ((), ())),
        preferred_element_type=jnp.float32)
    out_ref[...] = (logits + pb_ref[...]).astype(out_ref.dtype)


def _positional_encoding(seq_len, d_model):
    pos = jnp.arange(seq_len, dtype=jnp.float32)[:, None]
    i = jnp.arange(0, d_model, 2, dtype=jnp.float32)[None, :]
    angle = pos / jnp.power(10000.0, i / d_model)
    pe = jnp.zeros((seq_len, d_model), jnp.float32)
    pe = pe.at[:, 0::2].set(jnp.sin(angle))
    pe = pe.at[:, 1::2].set(jnp.cos(angle))
    return pe


def init_params(key, d_vocab, d_model, dim_feedforward):
    ks = jax.random.split(key, 16)
    wf = lambda k, s: (0.02 * jax.random.normal(k, s)).astype(jnp.bfloat16)
    zeros = lambda s: jnp.zeros(s, jnp.float32)
    ones = lambda s: jnp.ones(s, jnp.float32)
    p = {
        # tied embedding / projection weight, stored (V, D) in bf16
        "emb": wf(ks[0], (d_vocab, d_model)),
        "proj_b": zeros((1, d_vocab)),
        # pre FF sublayer
        "ff1_g": ones((1, d_model)), "ff1_b": zeros((1, d_model)),
        "ff1_w1": wf(ks[1], (d_model, dim_feedforward)), "ff1_b1": zeros((1, dim_feedforward)),
        "ff1_w2": wf(ks[2], (dim_feedforward, d_model)), "ff1_b2": zeros((1, d_model)),
        # attention sublayer (1 head)
        "at_g": ones((1, d_model)), "at_b": zeros((1, d_model)),
        "wq": wf(ks[3], (d_model, d_model)), "bq": zeros((1, d_model)),
        "wk": wf(ks[4], (d_model, d_model)), "bk": zeros((1, d_model)),
        "wv": wf(ks[5], (d_model, d_model)), "bv": zeros((1, d_model)),
        "wo": wf(ks[6], (d_model, d_model)), "bo": zeros((1, d_model)),
        # post FF sublayer
        "ff2_g": ones((1, d_model)), "ff2_b": zeros((1, d_model)),
        "ff2_w1": wf(ks[7], (d_model, dim_feedforward)), "ff2_b1": zeros((1, dim_feedforward)),
        "ff2_w2": wf(ks[8], (dim_feedforward, d_model)), "ff2_b2": zeros((1, d_model)),
        # final encoder LayerNorm
        "fin_g": ones((1, d_model)), "fin_b": zeros((1, d_model)),
    }
    return p


def _invariant_spec(arr):
    # Full-array block, same block at every grid step.  Single-buffer the
    # invariant weights (halves their VMEM footprint vs default pipelining).
    nd = arr.ndim
    idx = lambda *_args, _nd=nd: (0,) * _nd
    if _HAS_BUFFERED:
        try:
            return pl.BlockSpec(arr.shape, idx, pipeline_mode=pl.Buffered(1))
        except TypeError:
            pass
    return pl.BlockSpec(arr.shape, idx)


def _pick_tile(total, candidates):
    for c in candidates:
        if c <= total and total % c == 0:
            return c
    return total


def _pick_proj_tiles(bs, v, d, vmem_budget):
    # Largest lane-dense tiles whose (double-buffered) footprint fits VMEM.
    tm = _pick_tile(bs, [512, 256, 128, 64, 32, 16, 8])
    for tn in (2048, 1024, 512, 256, 128):
        if tn <= v and v % tn == 0:
            need = (2 * (tn * d * 2 + tn * 4)      # emb tile (bf16) + bias
                    + 2 * tm * d * 2               # y tile (bf16)
                    + 2 * tm * tn * 2)             # logits tile (bf16)
            if need <= int(vmem_budget * 0.8):
                return tm, tn
    return tm, _pick_tile(v, [128])


@jax.jit
def soweli_kule_forward(token_ids, padding_mask, params):
    B, S = token_ids.shape
    V, D = params["emb"].shape
    BS = B * S
    emb = params["emb"]                                        # (V, D) bf16

    # glue: embedding gather + sinusoidal PE (dropout is identity in eval)
    x = jnp.take(emb, token_ids, axis=0).astype(jnp.float32) * math.sqrt(D)
    x = (x + _positional_encoding(S, D)[None]).reshape(BS, D)  # (B*S, D) f32
    pbias = jnp.where(padding_mask, -1e9, 0.0).astype(jnp.float32)[:, None, :]

    weight_order = [
        "ff1_g", "ff1_b", "ff1_w1", "ff1_b1", "ff1_w2", "ff1_b2",
        "at_g", "at_b", "wq", "bq", "wk", "bk", "wv", "bv", "wo", "bo",
        "ff2_g", "ff2_b", "ff2_w1", "ff2_b1", "ff2_w2", "ff2_b2",
        "fin_g", "fin_b",
    ]
    weights = [params[name] for name in weight_order]

    # Kernel 1: encoder, one batch element (S, D) per grid step.
    # Batch axis is "parallel" -> v7x can shard it across both TensorCores,
    # and BlockSpec double-buffers x / y behind compute.
    y = pl.pallas_call(
        encoder_kernel,
        out_shape=jax.ShapeDtypeStruct((BS, D), jnp.bfloat16),
        grid_spec=pltpu.PrefetchScalarGridSpec(
            num_scalar_prefetch=0,
            grid=(B,),
            in_specs=[pl.BlockSpec((S, D), lambda b: (b, 0)),
                      pl.BlockSpec((1, 1, S), lambda b: (b, 0, 0))]
                     + [_invariant_spec(w) for w in weights],
            out_specs=pl.BlockSpec((S, D), lambda b: (b, 0)),
        ),
        compiler_params=pltpu.CompilerParams(
            dimension_semantics=("parallel",),
            vmem_limit_bytes=VMEM_LIMIT),
    )(x, pbias, *weights)

    # Kernel 2: tied output projection.  Vocab axis OUTER, row axis INNER so
    # the (V, D) embedding table is streamed from HBM exactly once (its block
    # index is invariant along the inner axis) while the tiny y tile is
    # re-read.  Logits stored as bf16 to halve the dominant HBM writeback.
    TM, TN = _pick_proj_tiles(BS, V, D, VMEM_LIMIT)
    logits = pl.pallas_call(
        projection_kernel,
        out_shape=jax.ShapeDtypeStruct((BS, V), jnp.bfloat16),
        grid_spec=pltpu.PrefetchScalarGridSpec(
            num_scalar_prefetch=0,
            grid=(V // TN, BS // TM),
            in_specs=[pl.BlockSpec((TM, D), lambda j, i: (i, 0)),
                      pl.BlockSpec((TN, D), lambda j, i: (j, 0)),
                      pl.BlockSpec((1, TN), lambda j, i: (0, j))],
            out_specs=pl.BlockSpec((TM, TN), lambda j, i: (i, j)),
        ),
        compiler_params=pltpu.CompilerParams(
            dimension_semantics=("parallel", "parallel"),
            vmem_limit_bytes=VMEM_LIMIT),
    )(y, emb, params["proj_b"])

    return logits.reshape(B, S, V)


if __name__ == "__main__":
    # small but (8,128)-aligned toy config: D, V multiples of 128; S multiple of 8
    d_vocab, d_model, dim_ff = 1024, 128, 256
    B, S = 2, 16

    key = jax.random.PRNGKey(0)
    k_param, k_ids = jax.random.split(key)
    params = init_params(k_param, d_vocab, d_model, dim_ff)

    token_ids = jax.random.randint(k_ids, (B, S), 0, d_vocab, dtype=jnp.int32)
    padding_mask = jnp.zeros((B, S), dtype=bool)   # no padded positions

    logits = soweli_kule_forward(token_ids, padding_mask, params)
    jax.block_until_ready(logits)
    assert logits.shape == (B, S, d_vocab)
    assert bool(jnp.all(jnp.isfinite(logits.astype(jnp.float32))))
    print("KERNEL_OK")
</pallas_src>

<mosaic_0001>
module attributes {stable_mosaic.version = 11 : i64} {
  func.func @encoder_kernel(%arg0: i32, %arg1: memref<16x128xf32, #tpu.memory_space<vmem>>, %arg2: memref<1x1x16xf32, #tpu.memory_space<vmem>>, %arg3: memref<1x128xf32, #tpu.memory_space<vmem>>, %arg4: memref<1x128xf32, #tpu.memory_space<vmem>>, %arg5: memref<128x256xbf16, #tpu.memory_space<vmem>>, %arg6: memref<1x256xf32, #tpu.memory_space<vmem>>, %arg7: memref<256x128xbf16, #tpu.memory_space<vmem>>, %arg8: memref<1x128xf32, #tpu.memory_space<vmem>>, %arg9: memref<1x128xf32, #tpu.memory_space<vmem>>, %arg10: memref<1x128xf32, #tpu.memory_space<vmem>>, %arg11: memref<128x128xbf16, #tpu.memory_space<vmem>>, %arg12: memref<1x128xf32, #tpu.memory_space<vmem>>, %arg13: memref<128x128xbf16, #tpu.memory_space<vmem>>, %arg14: memref<1x128xf32, #tpu.memory_space<vmem>>, %arg15: memref<128x128xbf16, #tpu.memory_space<vmem>>, %arg16: memref<1x128xf32, #tpu.memory_space<vmem>>, %arg17: memref<128x128xbf16, #tpu.memory_space<vmem>>, %arg18: memref<1x128xf32, #tpu.memory_space<vmem>>, %arg19: memref<1x128xf32, #tpu.memory_space<vmem>>, %arg20: memref<1x128xf32, #tpu.memory_space<vmem>>, %arg21: memref<128x256xbf16, #tpu.memory_space<vmem>>, %arg22: memref<1x256xf32, #tpu.memory_space<vmem>>, %arg23: memref<256x128xbf16, #tpu.memory_space<vmem>>, %arg24: memref<1x128xf32, #tpu.memory_space<vmem>>, %arg25: memref<1x128xf32, #tpu.memory_space<vmem>>, %arg26: memref<1x128xf32, #tpu.memory_space<vmem>>, %arg27: memref<16x128xbf16, #tpu.memory_space<vmem>>) attributes {dimension_semantics = [#tpu.dimension_semantics<parallel>], iteration_bounds = array<i64: 2>, scalar_prefetch = 0 : i64, scratch_operands = 0 : i64, tpu.core_type = #tpu.core_type<tc>, window_params = [{transform_indices = @transform_0, window_bounds = array<i64: 16, 128>}, {transform_indices = @transform_1, window_bounds = array<i64: 1, 1, 16>}, {pipeline_mode = #tpu.pipeline_mode<synchronous>, transform_indices = @transform_2, window_bounds = array<i64: 1, 128>}, {pipeline_mode = #tpu.pipeline_mode<synchronous>, transform_indices = @transform_3, window_bounds = array<i64: 1, 128>}, {pipeline_mode = #tpu.pipeline_mode<synchronous>, transform_indices = @transform_4, window_bounds = array<i64: 128, 256>}, {pipeline_mode = #tpu.pipeline_mode<synchronous>, transform_indices = @transform_5, window_bounds = array<i64: 1, 256>}, {pipeline_mode = #tpu.pipeline_mode<synchronous>, transform_indices = @transform_6, window_bounds = array<i64: 256, 128>}, {pipeline_mode = #tpu.pipeline_mode<synchronous>, transform_indices = @transform_7, window_bounds = array<i64: 1, 128>}, {pipeline_mode = #tpu.pipeline_mode<synchronous>, transform_indices = @transform_8, window_bounds = array<i64: 1, 128>}, {pipeline_mode = #tpu.pipeline_mode<synchronous>, transform_indices = @transform_9, window_bounds = array<i64: 1, 128>}, {pipeline_mode = #tpu.pipeline_mode<synchronous>, transform_indices = @transform_10, window_bounds = array<i64: 128, 128>}, {pipeline_mode = #tpu.pipeline_mode<synchronous>, transform_indices = @transform_11, window_bounds = array<i64: 1, 128>}, {pipeline_mode = #tpu.pipeline_mode<synchronous>, transform_indices = @transform_12, window_bounds = array<i64: 128, 128>}, {pipeline_mode = #tpu.pipeline_mode<synchronous>, transform_indices = @transform_13, window_bounds = array<i64: 1, 128>}, {pipeline_mode = #tpu.pipeline_mode<synchronous>, transform_indices = @transform_14, window_bounds = array<i64: 128, 128>}, {pipeline_mode = #tpu.pipeline_mode<synchronous>, transform_indices = @transform_15, window_bounds = array<i64: 1, 128>}, {pipeline_mode = #tpu.pipeline_mode<synchronous>, transform_indices = @transform_16, window_bounds = array<i64: 128, 128>}, {pipeline_mode = #tpu.pipeline_mode<synchronous>, transform_indices = @transform_17, window_bounds = array<i64: 1, 128>}, {pipeline_mode = #tpu.pipeline_mode<synchronous>, transform_indices = @transform_18, window_bounds = array<i64: 1, 128>}, {pipeline_mode = #tpu.pipeline_mode<synchronous>, transform_indices = @transform_19, window_bounds = array<i64: 1, 128>}, {pipeline_mode = #tpu.pipeline_mode<synchronous>, transform_indices = @transform_20, window_bounds = array<i64: 128, 256>}, {pipeline_mode = #tpu.pipeline_mode<synchronous>, transform_indices = @transform_21, window_bounds = array<i64: 1, 256>}, {pipeline_mode = #tpu.pipeline_mode<synchronous>, transform_indices = @transform_22, window_bounds = array<i64: 256, 128>}, {pipeline_mode = #tpu.pipeline_mode<synchronous>, transform_indices = @transform_23, window_bounds = array<i64: 1, 128>}, {pipeline_mode = #tpu.pipeline_mode<synchronous>, transform_indices = @transform_24, window_bounds = array<i64: 1, 128>}, {pipeline_mode = #tpu.pipeline_mode<synchronous>, transform_indices = @transform_25, window_bounds = array<i64: 1, 128>}, {transform_indices = @transform_26, window_bounds = array<i64: 16, 128>}]} {
    %c0 = arith.constant 0 : index
    %c0_0 = arith.constant 0 : index
    %0 = vector.load %arg1[%c0, %c0_0] : memref<16x128xf32, #tpu.memory_space<vmem>>, vector<16x128xf32>
    %c0_1 = arith.constant 0 : index
    %c0_2 = arith.constant 0 : index
    %1 = vector.load %arg3[%c0_1, %c0_2] : memref<1x128xf32, #tpu.memory_space<vmem>>, vector<1x128xf32>
    %c0_3 = arith.constant 0 : index
    %c0_4 = arith.constant 0 : index
    %2 = vector.load %arg4[%c0_3, %c0_4] : memref<1x128xf32, #tpu.memory_space<vmem>>, vector<1x128xf32>
    %c0_5 = arith.constant 0 : index
    %c0_6 = arith.constant 0 : index
    %3 = vector.load %arg5[%c0_5, %c0_6] : memref<128x256xbf16, #tpu.memory_space<vmem>>, vector<128x256xbf16>
    %c0_7 = arith.constant 0 : index
    %c0_8 = arith.constant 0 : index
    %4 = vector.load %arg6[%c0_7, %c0_8] : memref<1x256xf32, #tpu.memory_space<vmem>>, vector<1x256xf32>
    %c0_9 = arith.constant 0 : index
    %c0_10 = arith.constant 0 : index
    %5 = vector.load %arg7[%c0_9, %c0_10] : memref<256x128xbf16, #tpu.memory_space<vmem>>, vector<256x128xbf16>
    %c0_11 = arith.constant 0 : index
    %c0_12 = arith.constant 0 : index
    %6 = vector.load %arg8[%c0_11, %c0_12] : memref<1x128xf32, #tpu.memory_space<vmem>>, vector<1x128xf32>
    %cst = arith.constant dense<0.000000e+00> : vector<16xf32>
    %7 = vector.multi_reduction <add>, %0, %cst [1] : vector<16x128xf32> to vector<16xf32>
    %8 = vector.shape_cast %7 : vector<16xf32> to vector<16x1xf32>
    %cst_13 = arith.constant 1.280000e+02 : f32
    %9 = vector.broadcast %cst_13 : f32 to vector<16x1xf32>
    %10 = arith.divf %8, %9 : vector<16x1xf32>
    %11 = vector.broadcast %10 : vector<16x1xf32> to vector<16x128xf32>
    %12 = arith.subf %0, %11 : vector<16x128xf32>
    %13 = arith.mulf %12, %12 : vector<16x128xf32>
    %cst_14 = arith.constant dense<0.000000e+00> : vector<16xf32>
    %14 = vector.multi_reduction <add>, %13, %cst_14 [1] : vector<16x128xf32> to vector<16xf32>
    %15 = vector.shape_cast %14 : vector<16xf32> to vector<16x1xf32>
    %cst_15 = arith.constant 1.280000e+02 : f32
    %16 = vector.broadcast %cst_15 : f32 to vector<16x1xf32>
    %17 = arith.divf %15, %16 : vector<16x1xf32>
    %18 = vector.broadcast %10 : vector<16x1xf32> to vector<16x128xf32>
    %19 = arith.subf %0, %18 : vector<16x128xf32>
    %cst_16 = arith.constant 9.99999974E-6 : f32
    %20 = vector.broadcast %cst_16 : f32 to vector<16x1xf32>
    %21 = arith.addf %17, %20 : vector<16x1xf32>
    %22 = math.rsqrt %21 : vector<16x1xf32>
    %23 = vector.broadcast %22 : vector<16x1xf32> to vector<16x128xf32>
    %24 = arith.mulf %19, %23 : vector<16x128xf32>
    %25 = vector.broadcast %1 : vector<1x128xf32> to vector<16x128xf32>
    %26 = arith.mulf %24, %25 : vector<16x128xf32>
    %27 = vector.broadcast %2 : vector<1x128xf32> to vector<16x128xf32>
    %28 = arith.addf %26, %27 : vector<16x128xf32>
    %29 = arith.truncf %28 : vector<16x128xf32> to vector<16x128xbf16>
    %cst_17 = arith.constant dense<0.000000e+00> : vector<16x256xf32>
    %30 = tpu.matmul %29, %3, %cst_17 {dimension_numbers = #tpu.dot_dimension_numbers<[1], [0], [0], [1], [0, 0, 1, 1], [], []>} : vector<16x128xbf16>, vector<128x256xbf16>, vector<16x256xf32> -> vector<16x256xf32>
    %31 = vector.broadcast %4 : vector<1x256xf32> to vector<16x256xf32>
    %32 = arith.addf %30, %31 : vector<16x256xf32>
    %cst_18 = arith.constant 0.000000e+00 : f32
    %33 = vector.broadcast %cst_18 : f32 to vector<16x256xf32>
    %34 = arith.maximumf %32, %33 : vector<16x256xf32>
    %35 = arith.truncf %34 : vector<16x256xf32> to vector<16x256xbf16>
    %cst_19 = arith.constant dense<0.000000e+00> : vector<16x128xf32>
    %36 = tpu.matmul %35, %5, %cst_19 {dimension_numbers = #tpu.dot_dimension_numbers<[1], [0], [0], [1], [0, 0, 1, 1], [], []>} : vector<16x256xbf16>, vector<256x128xbf16>, vector<16x128xf32> -> vector<16x128xf32>
    %37 = arith.addf %0, %36 : vector<16x128xf32>
    %38 = vector.broadcast %6 : vector<1x128xf32> to vector<16x128xf32>
    %39 = arith.addf %37, %38 : vector<16x128xf32>
    %c0_20 = arith.constant 0 : index
    %c0_21 = arith.constant 0 : index
    %40 = vector.load %arg9[%c0_20, %c0_21] : memref<1x128xf32, #tpu.memory_space<vmem>>, vector<1x128xf32>
    %c0_22 = arith.constant 0 : index
    %c0_23 = arith.constant 0 : index
    %41 = vector.load %arg10[%c0_22, %c0_23] : memref<1x128xf32, #tpu.memory_space<vmem>>, vector<1x128xf32>
    %cst_24 = arith.constant dense<0.000000e+00> : vector<16xf32>
    %42 = vector.multi_reduction <add>, %39, %cst_24 [1] : vector<16x128xf32> to vector<16xf32>
    %43 = vector.shape_cast %42 : vector<16xf32> to vector<16x1xf32>
    %cst_25 = arith.constant 1.280000e+02 : f32
    %44 = vector.broadcast %cst_25 : f32 to vector<16x1xf32>
    %45 = arith.divf %43, %44 : vector<16x1xf32>
    %46 = vector.broadcast %45 : vector<16x1xf32> to vector<16x128xf32>
    %47 = arith.subf %39, %46 : vector<16x128xf32>
    %48 = arith.mulf %47, %47 : vector<16x128xf32>
    %cst_26 = arith.constant dense<0.000000e+00> : vector<16xf32>
    %49 = vector.multi_reduction <add>, %48, %cst_26 [1] : vector<16x128xf32> to vector<16xf32>
    %50 = vector.shape_cast %49 : vector<16xf32> to vector<16x1xf32>
    %cst_27 = arith.constant 1.280000e+02 : f32
    %51 = vector.broadcast %cst_27 : f32 to vector<16x1xf32>
    %52 = arith.divf %50, %51 : vector<16x1xf32>
    %53 = vector.broadcast %45 : vector<16x1xf32> to vector<16x128xf32>
    %54 = arith.subf %39, %53 : vector<16x128xf32>
    %cst_28 = arith.constant 9.99999974E-6 : f32
    %55 = vector.broadcast %cst_28 : f32 to vector<16x1xf32>
    %56 = arith.addf %52, %55 : vector<16x1xf32>
    %57 = math.rsqrt %56 : vector<16x1xf32>
    %58 = vector.broadcast %57 : vector<16x1xf32> to vector<16x128xf32>
    %59 = arith.mulf %54, %58 : vector<16x128xf32>
    %60 = vector.broadcast %40 : vector<1x128xf32> to vector<16x128xf32>
    %61 = arith.mulf %59, %60 : vector<16x128xf32>
    %62 = vector.broadcast %41 : vector<1x128xf32> to vector<16x128xf32>
    %63 = arith.addf %61, %62 : vector<16x128xf32>
    %64 = arith.truncf %63 : vector<16x128xf32> to vector<16x128xbf16>
    %c0_29 = arith.constant 0 : index
    %c0_30 = arith.constant 0 : index
    %65 = vector.load %arg11[%c0_29, %c0_30] : memref<128x128xbf16, #tpu.memory_space<vmem>>, vector<128x128xbf16>
    %cst_31 = arith.constant dense<0.000000e+00> : vector<16x128xf32>
    %66 = tpu.matmul %64, %65, %cst_31 {dimension_numbers = #tpu.dot_dimension_numbers<[1], [0], [0], [1], [0, 0, 1, 1], [], []>} : vector<16x128xbf16>, vector<128x128xbf16>, vector<16x128xf32> -> vector<16x128xf32>
    %c0_32 = arith.constant 0 : index
    %c0_33 = arith.constant 0 : index
    %67 = vector.load %arg12[%c0_32, %c0_33] : memref<1x128xf32, #tpu.memory_space<vmem>>, vector<1x128xf32>
    %68 = vector.broadcast %67 : vector<1x128xf32> to vector<16x128xf32>
    %69 = arith.addf %66, %68 : vector<16x128xf32>
    %cst_34 = arith.constant 0.0883883461 : f32
    %70 = vector.broadcast %cst_34 : f32 to vector<16x128xf32>
    %71 = arith.mulf %69, %70 : vector<16x128xf32>
    %72 = arith.truncf %71 : vector<16x128xf32> to vector<16x128xbf16>
    %c0_35 = arith.constant 0 : index
    %c0_36 = arith.constant 0 : index
    %73 = vector.load %arg13[%c0_35, %c0_36] : memref<128x128xbf16, #tpu.memory_space<vmem>>, vector<128x128xbf16>
    %cst_37 = arith.constant dense<0.000000e+00> : vector<16x128xf32>
    %74 = tpu.matmul %64, %73, %cst_37 {dimension_numbers = #tpu.dot_dimension_numbers<[1], [0], [0], [1], [0, 0, 1, 1], [], []>} : vector<16x128xbf16>, vector<128x128xbf16>, vector<16x128xf32> -> vector<16x128xf32>
    %c0_38 = arith.constant 0 : index
    %c0_39 = arith.constant 0 : index
    %75 = vector.load %arg14[%c0_38, %c0_39] : memref<1x128xf32, #tpu.memory_space<vmem>>, vector<1x128xf32>
    %76 = vector.broadcast %75 : vector<1x128xf32> to vector<16x128xf32>
    %77 = arith.addf %74, %76 : vector<16x128xf32>
    %78 = arith.truncf %77 : vector<16x128xf32> to vector<16x128xbf16>
    %c0_40 = arith.constant 0 : index
    %c0_41 = arith.constant 0 : index
    %79 = vector.load %arg15[%c0_40, %c0_41] : memref<128x128xbf16, #tpu.memory_space<vmem>>, vector<128x128xbf16>
    %cst_42 = arith.constant dense<0.000000e+00> : vector<16x128xf32>
    %80 = tpu.matmul %64, %79, %cst_42 {dimension_numbers = #tpu.dot_dimension_numbers<[1], [0], [0], [1], [0, 0, 1, 1], [], []>} : vector<16x128xbf16>, vector<128x128xbf16>, vector<16x128xf32> -> vector<16x128xf32>
    %c0_43 = arith.constant 0 : index
    %c0_44 = arith.constant 0 : index
    %81 = vector.load %arg16[%c0_43, %c0_44] : memref<1x128xf32, #tpu.memory_space<vmem>>, vector<1x128xf32>
    %82 = vector.broadcast %81 : vector<1x128xf32> to vector<16x128xf32>
    %83 = arith.addf %80, %82 : vector<16x128xf32>
    %84 = arith.truncf %83 : vector<16x128xf32> to vector<16x128xbf16>
    %cst_45 = arith.constant dense<0.000000e+00> : vector<16x16xf32>
    %85 = tpu.matmul %72, %78, %cst_45 {dimension_numbers = #tpu.dot_dimension_numbers<[1], [1], [0], [0], [0, 0, 1, 0], [], []>} : vector<16x128xbf16>, vector<16x128xbf16>, vector<16x16xf32> -> vector<16x16xf32>
    %c0_46 = arith.constant 0 : index
    %c0_47 = arith.constant 0 : index
    %c0_48 = arith.constant 0 : index
    %86 = vector.load %arg2[%c0_46, %c0_47, %c0_48] : memref<1x1x16xf32, #tpu.memory_space<vmem>>, vector<1x1x16xf32>
    %87 = vector.shape_cast %86 : vector<1x1x16xf32> to vector<1x16xf32>
    %88 = vector.broadcast %87 : vector<1x16xf32> to vector<16x16xf32>
    %89 = arith.addf %85, %88 : vector<16x16xf32>
    %cst_49 = arith.constant dense<0xFF800000> : vector<16xf32>
    %90 = vector.multi_reduction <maximumf>, %89, %cst_49 [1] : vector<16x16xf32> to vector<16xf32>
    %91 = vector.shape_cast %90 : vector<16xf32> to vector<16x1xf32>
    %92 = vector.broadcast %91 : vector<16x1xf32> to vector<16x16xf32>
    %93 = arith.subf %89, %92 : vector<16x16xf32>
    %94 = math.exp %93 : vector<16x16xf32>
    %cst_50 = arith.constant dense<0.000000e+00> : vector<16xf32>
    %95 = vector.multi_reduction <add>, %94, %cst_50 [1] : vector<16x16xf32> to vector<16xf32>
    %96 = vector.shape_cast %95 : vector<16xf32> to vector<16x1xf32>
    %97 = tpu.reciprocal %96 {approx = true} : vector<16x1xf32> -> vector<16x1xf32>
    %98 = vector.broadcast %97 : vector<16x1xf32> to vector<16x16xf32>
    %99 = arith.mulf %94, %98 : vector<16x16xf32>
    %100 = arith.truncf %99 : vector<16x16xf32> to vector<16x16xbf16>
    %cst_51 = arith.constant dense<0.000000e+00> : vector<16x128xf32>
    %101 = tpu.matmul %100, %84, %cst_51 {dimension_numbers = #tpu.dot_dimension_numbers<[1], [0], [0], [1], [0, 0, 1, 1], [], []>} : vector<16x16xbf16>, vector<16x128xbf16>, vector<16x128xf32> -> vector<16x128xf32>
    %102 = arith.truncf %101 : vector<16x128xf32> to vector<16x128xbf16>
    %c0_52 = arith.constant 0 : index
    %c0_53 = arith.constant 0 : index
    %103 = vector.load %arg17[%c0_52, %c0_53] : memref<128x128xbf16, #tpu.memory_space<vmem>>, vector<128x128xbf16>
    %cst_54 = arith.constant dense<0.000000e+00> : vector<16x128xf32>
    %104 = tpu.matmul %102, %103, %cst_54 {dimension_numbers = #tpu.dot_dimension_numbers<[1], [0], [0], [1], [0, 0, 1, 1], [], []>} : vector<16x128xbf16>, vector<128x128xbf16>, vector<16x128xf32> -> vector<16x128xf32>
    %c0_55 = arith.constant 0 : index
    %c0_56 = arith.constant 0 : index
    %105 = vector.load %arg18[%c0_55, %c0_56] : memref<1x128xf32, #tpu.memory_space<vmem>>, vector<1x128xf32>
    %106 = vector.broadcast %105 : vector<1x128xf32> to vector<16x128xf32>
    %107 = arith.addf %104, %106 : vector<16x128xf32>
    %c0_57 = arith.constant 0 : index
    %c0_58 = arith.constant 0 : index
    %108 = vector.load %arg19[%c0_57, %c0_58] : memref<1x128xf32, #tpu.memory_space<vmem>>, vector<1x128xf32>
    %c0_59 = arith.constant 0 : index
    %c0_60 = arith.constant 0 : index
    %109 = vector.load %arg20[%c0_59, %c0_60] : memref<1x128xf32, #tpu.memory_space<vmem>>, vector<1x128xf32>
    %c0_61 = arith.constant 0 : index
    %c0_62 = arith.constant 0 : index
    %110 = vector.load %arg21[%c0_61, %c0_62] : memref<128x256xbf16, #tpu.memory_space<vmem>>, vector<128x256xbf16>
    %c0_63 = arith.constant 0 : index
    %c0_64 = arith.constant 0 : index
    %111 = vector.load %arg22[%c0_63, %c0_64] : memref<1x256xf32, #tpu.memory_space<vmem>>, vector<1x256xf32>
    %c0_65 = arith.constant 0 : index
    %c0_66 = arith.constant 0 : index
    %112 = vector.load %arg23[%c0_65, %c0_66] : memref<256x128xbf16, #tpu.memory_space<vmem>>, vector<256x128xbf16>
    %c0_67 = arith.constant 0 : index
    %c0_68 = arith.constant 0 : index
    %113 = vector.load %arg24[%c0_67, %c0_68] : memref<1x128xf32, #tpu.memory_space<vmem>>, vector<1x128xf32>
    %cst_69 = arith.constant dense<0.000000e+00> : vector<16xf32>
    %114 = vector.multi_reduction <add>, %107, %cst_69 [1] : vector<16x128xf32> to vector<16xf32>
    %115 = vector.shape_cast %114 : vector<16xf32> to vector<16x1xf32>
    %cst_70 = arith.constant 1.280000e+02 : f32
    %116 = vector.broadcast %cst_70 : f32 to vector<16x1xf32>
    %117 = arith.divf %115, %116 : vector<16x1xf32>
    %118 = vector.broadcast %117 : vector<16x1xf32> to vector<16x128xf32>
    %119 = arith.subf %107, %118 : vector<16x128xf32>
    %120 = arith.mulf %119, %119 : vector<16x128xf32>
    %cst_71 = arith.constant dense<0.000000e+00> : vector<16xf32>
    %121 = vector.multi_reduction <add>, %120, %cst_71 [1] : vector<16x128xf32> to vector<16xf32>
    %122 = vector.shape_cast %121 : vector<16xf32> to vector<16x1xf32>
    %cst_72 = arith.constant 1.280000e+02 : f32
    %123 = vector.broadcast %cst_72 : f32 to vector<16x1xf32>
    %124 = arith.divf %122, %123 : vector<16x1xf32>
    %125 = vector.broadcast %117 : vector<16x1xf32> to vector<16x128xf32>
    %126 = arith.subf %107, %125 : vector<16x128xf32>
    %cst_73 = arith.constant 9.99999974E-6 : f32
    %127 = vector.broadcast %cst_73 : f32 to vector<16x1xf32>
    %128 = arith.addf %124, %127 : vector<16x1xf32>
    %129 = math.rsqrt %128 : vector<16x1xf32>
    %130 = vector.broadcast %129 : vector<16x1xf32> to vector<16x128xf32>
    %131 = arith.mulf %126, %130 : vector<16x128xf32>
    %132 = vector.broadcast %108 : vector<1x128xf32> to vector<16x128xf32>
    %133 = arith.mulf %131, %132 : vector<16x128xf32>
    %134 = vector.broadcast %109 : vector<1x128xf32> to vector<16x128xf32>
    %135 = arith.addf %133, %134 : vector<16x128xf32>
    %136 = arith.truncf %135 : vector<16x128xf32> to vector<16x128xbf16>
    %cst_74 = arith.constant dense<0.000000e+00> : vector<16x256xf32>
    %137 = tpu.matmul %136, %110, %cst_74 {dimension_numbers = #tpu.dot_dimension_numbers<[1], [0], [0], [1], [0, 0, 1, 1], [], []>} : vector<16x128xbf16>, vector<128x256xbf16>, vector<16x256xf32> -> vector<16x256xf32>
    %138 = vector.broadcast %111 : vector<1x256xf32> to vector<16x256xf32>
    %139 = arith.addf %137, %138 : vector<16x256xf32>
    %cst_75 = arith.constant 0.000000e+00 : f32
    %140 = vector.broadcast %cst_75 : f32 to vector<16x256xf32>
    %141 = arith.maximumf %139, %140 : vector<16x256xf32>
    %142 = arith.truncf %141 : vector<16x256xf32> to vector<16x256xbf16>
    %cst_76 = arith.constant dense<0.000000e+00> : vector<16x128xf32>
    %143 = tpu.matmul %142, %112, %cst_76 {dimension_numbers = #tpu.dot_dimension_numbers<[1], [0], [0], [1], [0, 0, 1, 1], [], []>} : vector<16x256xbf16>, vector<256x128xbf16>, vector<16x128xf32> -> vector<16x128xf32>
    %144 = arith.addf %107, %143 : vector<16x128xf32>
    %145 = vector.broadcast %113 : vector<1x128xf32> to vector<16x128xf32>
    %146 = arith.addf %144, %145 : vector<16x128xf32>
    %c0_77 = arith.constant 0 : index
    %c0_78 = arith.constant 0 : index
    %147 = vector.load %arg25[%c0_77, %c0_78] : memref<1x128xf32, #tpu.memory_space<vmem>>, vector<1x128xf32>
    %c0_79 = arith.constant 0 : index
    %c0_80 = arith.constant 0 : index
    %148 = vector.load %arg26[%c0_79, %c0_80] : memref<1x128xf32, #tpu.memory_space<vmem>>, vector<1x128xf32>
    %cst_81 = arith.constant dense<0.000000e+00> : vector<16xf32>
    %149 = vector.multi_reduction <add>, %146, %cst_81 [1] : vector<16x128xf32> to vector<16xf32>
    %150 = vector.shape_cast %149 : vector<16xf32> to vector<16x1xf32>
    %cst_82 = arith.constant 1.280000e+02 : f32
    %151 = vector.broadcast %cst_82 : f32 to vector<16x1xf32>
    %152 = arith.divf %150, %151 : vector<16x1xf32>
    %153 = vector.broadcast %152 : vector<16x1xf32> to vector<16x128xf32>
    %154 = arith.subf %146, %153 : vector<16x128xf32>
    %155 = arith.mulf %154, %154 : vector<16x128xf32>
    %cst_83 = arith.constant dense<0.000000e+00> : vector<16xf32>
    %156 = vector.multi_reduction <add>, %155, %cst_83 [1] : vector<16x128xf32> to vector<16xf32>
    %157 = vector.shape_cast %156 : vector<16xf32> to vector<16x1xf32>
    %cst_84 = arith.constant 1.280000e+02 : f32
    %158 = vector.broadcast %cst_84 : f32 to vector<16x1xf32>
    %159 = arith.divf %157, %158 : vector<16x1xf32>
    %160 = vector.broadcast %152 : vector<16x1xf32> to vector<16x128xf32>
    %161 = arith.subf %146, %160 : vector<16x128xf32>
    %cst_85 = arith.constant 9.99999974E-6 : f32
    %162 = vector.broadcast %cst_85 : f32 to vector<16x1xf32>
    %163 = arith.addf %159, %162 : vector<16x1xf32>
    %164 = math.rsqrt %163 : vector<16x1xf32>
    %165 = vector.broadcast %164 : vector<16x1xf32> to vector<16x128xf32>
    %166 = arith.mulf %161, %165 : vector<16x128xf32>
    %167 = vector.broadcast %147 : vector<1x128xf32> to vector<16x128xf32>
    %168 = arith.mulf %166, %167 : vector<16x128xf32>
    %169 = vector.broadcast %148 : vector<1x128xf32> to vector<16x128xf32>
    %170 = arith.addf %168, %169 : vector<16x128xf32>
    %171 = arith.truncf %170 : vector<16x128xf32> to vector<16x128xbf16>
    %c0_86 = arith.constant 0 : index
    %c0_87 = arith.constant 0 : index
    %172 = vector.load %arg27[%c0_86, %c0_87] : memref<16x128xbf16, #tpu.memory_space<vmem>>, vector<16x128xbf16>
    tpu.vector_store %arg27[%c0_86, %c0_87], %171 {strides = array<i32>} : memref<16x128xbf16, #tpu.memory_space<vmem>>, vector<16x128xbf16>,
    return
  }
  func.func @transform_0(%arg0: i32) -> (i32, i32) {
    %c0_i32 = arith.constant 0 : i32
    %c0_i32_0 = arith.constant 0 : i32
    return %arg0, %c0_i32 : i32, i32
  }
  func.func @transform_1(%arg0: i32) -> (i32, i32, i32) {
    %c0_i32 = arith.constant 0 : i32
    %c0_i32_0 = arith.constant 0 : i32
    %c0_i32_1 = arith.constant 0 : i32
    return %arg0, %c0_i32, %c0_i32_0 : i32, i32, i32
  }
  func.func @transform_2(%arg0: i32) -> (i32, i32) {
    %c0_i32 = arith.constant 0 : i32
    %c0_i32_0 = arith.constant 0 : i32
    %c0_i32_1 = arith.constant 0 : i32
    return %c0_i32, %c0_i32_0 : i32, i32
  }
  func.func @transform_3(%arg0: i32) -> (i32, i32) {
    %c0_i32 = arith.constant 0 : i32
    %c0_i32_0 = arith.constant 0 : i32
    %c0_i32_1 = arith.constant 0 : i32
    return %c0_i32, %c0_i32_0 : i32, i32
  }
  func.func @transform_4(%arg0: i32) -> (i32, i32) {
    %c0_i32 = arith.constant 0 : i32
    %c0_i32_0 = arith.constant 0 : i32
    %c0_i32_1 = arith.constant 0 : i32
    return %c0_i32, %c0_i32_0 : i32, i32
  }
  func.func @transform_5(%arg0: i32) -> (i32, i32) {
    %c0_i32 = arith.constant 0 : i32
    %c0_i32_0 = arith.constant 0 : i32
    %c0_i32_1 = arith.constant 0 : i32
    return %c0_i32, %c0_i32_0 : i32, i32
  }
  func.func @transform_6(%arg0: i32) -> (i32, i32) {
    %c0_i32 = arith.constant 0 : i32
    %c0_i32_0 = arith.constant 0 : i32
    %c0_i32_1 = arith.constant 0 : i32
    return %c0_i32, %c0_i32_0 : i32, i32
  }
  func.func @transform_7(%arg0: i32) -> (i32, i32) {
    %c0_i32 = arith.constant 0 : i32
    %c0_i32_0 = arith.constant 0 : i32
    %c0_i32_1 = arith.constant 0 : i32
    return %c0_i32, %c0_i32_0 : i32, i32
  }
  func.func @transform_8(%arg0: i32) -> (i32, i32) {
    %c0_i32 = arith.constant 0 : i32
    %c0_i32_0 = arith.constant 0 : i32
    %c0_i32_1 = arith.constant 0 : i32
    return %c0_i32, %c0_i32_0 : i32, i32
  }
  func.func @transform_9(%arg0: i32) -> (i32, i32) {
    %c0_i32 = arith.constant 0 : i32
    %c0_i32_0 = arith.constant 0 : i32
    %c0_i32_1 = arith.constant 0 : i32
    return %c0_i32, %c0_i32_0 : i32, i32
  }
  func.func @transform_10(%arg0: i32) -> (i32, i32) {
    %c0_i32 = arith.constant 0 : i32
    %c0_i32_0 = arith.constant 0 : i32
    %c0_i32_1 = arith.constant 0 : i32
    return %c0_i32, %c0_i32_0 : i32, i32
  }
  func.func @transform_11(%arg0: i32) -> (i32, i32) {
    %c0_i32 = arith.constant 0 : i32
    %c0_i32_0 = arith.constant 0 : i32
    %c0_i32_1 = arith.constant 0 : i32
    return %c0_i32, %c0_i32_0 : i32, i32
  }
  func.func @transform_12(%arg0: i32) -> (i32, i32) {
    %c0_i32 = arith.constant 0 : i32
    %c0_i32_0 = arith.constant 0 : i32
    %c0_i32_1 = arith.constant 0 : i32
    return %c0_i32, %c0_i32_0 : i32, i32
  }
  func.func @transform_13(%arg0: i32) -> (i32, i32) {
    %c0_i32 = arith.constant 0 : i32
    %c0_i32_0 = arith.constant 0 : i32
    %c0_i32_1 = arith.constant 0 : i32
    return %c0_i32, %c0_i32_0 : i32, i32
  }
  func.func @transform_14(%arg0: i32) -> (i32, i32) {
    %c0_i32 = arith.constant 0 : i32
    %c0_i32_0 = arith.constant 0 : i32
    %c0_i32_1 = arith.constant 0 : i32
    return %c0_i32, %c0_i32_0 : i32, i32
  }
  func.func @transform_15(%arg0: i32) -> (i32, i32) {
    %c0_i32 = arith.constant 0 : i32
    %c0_i32_0 = arith.constant 0 : i32
    %c0_i32_1 = arith.constant 0 : i32
    return %c0_i32, %c0_i32_0 : i32, i32
  }
  func.func @transform_16(%arg0: i32) -> (i32, i32) {
    %c0_i32 = arith.constant 0 : i32
    %c0_i32_0 = arith.constant 0 : i32
    %c0_i32_1 = arith.constant 0 : i32
    return %c0_i32, %c0_i32_0 : i32, i32
  }
  func.func @transform_17(%arg0: i32) -> (i32, i32) {
    %c0_i32 = arith.constant 0 : i32
    %c0_i32_0 = arith.constant 0 : i32
    %c0_i32_1 = arith.constant 0 : i32
    return %c0_i32, %c0_i32_0 : i32, i32
  }
  func.func @transform_18(%arg0: i32) -> (i32, i32) {
    %c0_i32 = arith.constant 0 : i32
    %c0_i32_0 = arith.constant 0 : i32
    %c0_i32_1 = arith.constant 0 : i32
    return %c0_i32, %c0_i32_0 : i32, i32
  }
  func.func @transform_19(%arg0: i32) -> (i32, i32) {
    %c0_i32 = arith.constant 0 : i32
    %c0_i32_0 = arith.constant 0 : i32
    %c0_i32_1 = arith.constant 0 : i32
    return %c0_i32, %c0_i32_0 : i32, i32
  }
  func.func @transform_20(%arg0: i32) -> (i32, i32) {
    %c0_i32 = arith.constant 0 : i32
    %c0_i32_0 = arith.constant 0 : i32
    %c0_i32_1 = arith.constant 0 : i32
    return %c0_i32, %c0_i32_0 : i32, i32
  }
  func.func @transform_21(%arg0: i32) -> (i32, i32) {
    %c0_i32 = arith.constant 0 : i32
    %c0_i32_0 = arith.constant 0 : i32
    %c0_i32_1 = arith.constant 0 : i32
    return %c0_i32, %c0_i32_0 : i32, i32
  }
  func.func @transform_22(%arg0: i32) -> (i32, i32) {
    %c0_i32 = arith.constant 0 : i32
    %c0_i32_0 = arith.constant 0 : i32
    %c0_i32_1 = arith.constant 0 : i32
    return %c0_i32, %c0_i32_0 : i32, i32
  }
  func.func @transform_23(%arg0: i32) -> (i32, i32) {
    %c0_i32 = arith.constant 0 : i32
    %c0_i32_0 = arith.constant 0 : i32
    %c0_i32_1 = arith.constant 0 : i32
    return %c0_i32, %c0_i32_0 : i32, i32
  }
  func.func @transform_24(%arg0: i32) -> (i32, i32) {
    %c0_i32 = arith.constant 0 : i32
    %c0_i32_0 = arith.constant 0 : i32
    %c0_i32_1 = arith.constant 0 : i32
    return %c0_i32, %c0_i32_0 : i32, i32
  }
  func.func @transform_25(%arg0: i32) -> (i32, i32) {
    %c0_i32 = arith.constant 0 : i32
    %c0_i32_0 = arith.constant 0 : i32
    %c0_i32_1 = arith.constant 0 : i32
    return %c0_i32, %c0_i32_0 : i32, i32
  }
  func.func @transform_26(%arg0: i32) -> (i32, i32) {
    %c0_i32 = arith.constant 0 : i32
    %c0_i32_0 = arith.constant 0 : i32
    return %arg0, %c0_i32 : i32, i32
  }
}

module attributes {stable_mosaic.version = 11 : i64} {
  func.func @projection_kernel(%arg0: i32, %arg1: i32, %arg2: memref<32x128xbf16, #tpu.memory_space<vmem>>, %arg3: memref<1024x128xbf16, #tpu.memory_space<vmem>>, %arg4: memref<1x1024xf32, #tpu.memory_space<vmem>>, %arg5: memref<32x1024xbf16, #tpu.memory_space<vmem>>) attributes {dimension_semantics = [#tpu.dimension_semantics<parallel>, #tpu.dimension_semantics<parallel>], iteration_bounds = array<i64: 1, 1>, scalar_prefetch = 0 : i64, scratch_operands = 0 : i64, tpu.core_type = #tpu.core_type<tc>, window_params = [{transform_indices = @transform_0, window_bounds = array<i64: 32, 128>}, {transform_indices = @transform_1, window_bounds = array<i64: 1024, 128>}, {transform_indices = @transform_2, window_bounds = array<i64: 1, 1024>}, {transform_indices = @transform_3, window_bounds = array<i64: 32, 1024>}]} {
    %c0 = arith.constant 0 : index
    %c0_0 = arith.constant 0 : index
    %0 = vector.load %arg2[%c0, %c0_0] : memref<32x128xbf16, #tpu.memory_space<vmem>>, vector<32x128xbf16>
    %c0_1 = arith.constant 0 : index
    %c0_2 = arith.constant 0 : index
    %1 = vector.load %arg3[%c0_1, %c0_2] : memref<1024x128xbf16, #tpu.memory_space<vmem>>, vector<1024x128xbf16>
    %cst = arith.constant dense<0.000000e+00> : vector<32x1024xf32>
    %2 = tpu.matmul %0, %1, %cst {dimension_numbers = #tpu.dot_dimension_numbers<[1], [1], [0], [0], [0, 0, 1, 0], [], []>} : vector<32x128xbf16>, vector<1024x128xbf16>, vector<32x1024xf32> -> vector<32x1024xf32>
    %c0_3 = arith.constant 0 : index
    %c0_4 = arith.constant 0 : index
    %3 = vector.load %arg4[%c0_3, %c0_4] : memref<1x1024xf32, #tpu.memory_space<vmem>>, vector<1x1024xf32>
    %4 = vector.broadcast %3 : vector<1x1024xf32> to vector<32x1024xf32>
    %5 = arith.addf %2, %4 : vector<32x1024xf32>
    %6 = arith.truncf %5 : vector<32x1024xf32> to vector<32x1024xbf16>
    %c0_5 = arith.constant 0 : index
    %c0_6 = arith.constant 0 : index
    %7 = vector.load %arg5[%c0_5, %c0_6] : memref<32x1024xbf16, #tpu.memory_space<vmem>>, vector<32x1024xbf16>
    tpu.vector_store %arg5[%c0_5, %c0_6], %6 {strides = array<i32>} : memref<32x1024xbf16, #tpu.memory_space<vmem>>, vector<32x1024xbf16>,
    return
  }
  func.func @transform_0(%arg0: i32, %arg1: i32) -> (i32, i32) {
    %c0_i32 = arith.constant 0 : i32
    %c0_i32_0 = arith.constant 0 : i32
    return %arg1, %c0_i32 : i32, i32
  }
  func.func @transform_1(%arg0: i32, %arg1: i32) -> (i32, i32) {
    %c0_i32 = arith.constant 0 : i32
    %c0_i32_0 = arith.constant 0 : i32
    return %arg0, %c0_i32 : i32, i32
  }
  func.func @transform_2(%arg0: i32, %arg1: i32) -> (i32, i32) {
    %c0_i32 = arith.constant 0 : i32
    %c0_i32_0 = arith.constant 0 : i32
    return %c0_i32, %arg0 : i32, i32
  }
  func.func @transform_3(%arg0: i32, %arg1: i32) -> (i32, i32) {
    %c0_i32 = arith.constant 0 : i32
    return %arg1, %arg0 : i32, i32
  }
}

</mosaic_0001>

<bundles_post_ra>
// kernel: soweli_kule_forward.3
= control target key start
LH: loop header
LB: loop body
LE: loop exit
PB: predicated region body
PF: predicated region fallthrough
CT: control target
= control target key end

     0   :  { %s1473_s0 = inlined_call_operand.vmem [shape: bf16[32,128], index: 0, kind: input, shape index: {}]   ;;  %s1474_s1 = inlined_call_operand.vmem [shape: bf16[1024,128], index: 1, kind: input, shape index: {}]   ;;  %s1475_s2 = inlined_call_operand.vmem [shape: f32[1,1024], index: 2, kind: input, shape index: {}]   ;;  %s1476_s3 = inlined_call_operand.hbm [shape: bf16[32,1024], index: 3, kind: output, shape index: {}]  }
   0x1   :  { %v1107_v0 = vld [vmem:[%s1474_s1 + $0x40] sm:$0xff]   ;;  %v1111_v4 = vld [vmem:[%s1474_s1 + $0x48] sm:$0xff]   ;;  %v1115_v8 = vld [vmem:[%s1474_s1 + $0x50] sm:$0xff]  }
   0x2   :  { %v1108_v1 = vld [vmem:[%s1474_s1 + $0xc0] sm:$0xff]   ;;  %1024 = vmatprep.subr.bf16.mxu0 %v1107_v0  ;;  %v1112_v5 = vld [vmem:[%s1474_s1 + $0xc8] sm:$0xff]   ;;  %v1116_v9 = vld [vmem:[%s1474_s1 + $0xd0] sm:$0xff]  }
   0x3   :  { %v1109_v2 = vld [vmem:[%s1474_s1] sm:$0xff]   ;;  %1044 = vmatprep.subr.bf16.mxu1 %v1108_v1  ;;  %v1113_v6 = vld [vmem:[%s1474_s1 + $0x8] sm:$0xff]   ;;  %v1117_v10 = vld [vmem:[%s1474_s1 + $0x10] sm:$0xff]  }
   0x4   :  { %v1110_v3 = vld [vmem:[%s1474_s1 + $0x80] sm:$0xff]   ;;  %1025 = vmatpush3.bf16.xpose.msra.mxu0 %v1109_v2  ;;  %v1114_v7 = vld [vmem:[%s1474_s1 + $0x88] sm:$0xff]   ;;  %v1118_v11 = vld [vmem:[%s1474_s1 + $0x90] sm:$0xff]  }
   0x5   :  { %1045 = vmatpush3.bf16.xpose.msra.mxu1 %v1110_v3  ;;  %1026 = vmatprep.subr.bf16.mxu0 %v1111_v4  ;;  %v1119_v12 = vld [vmem:[%s1474_s1 + $0x58] sm:$0xff]   ;;  %v1123_v16 = vld [vmem:[%s1474_s1 + $0x60] sm:$0xff]   ;;  %v1127_v21 = vld [vmem:[%s1474_s1 + $0x68] sm:$0xff]  }
   0x6   :  { %1046 = vmatprep.subr.bf16.mxu1 %v1112_v5  ;;  %v1120_v13 = vld [vmem:[%s1474_s1 + $0xd8] sm:$0xff]   ;;  %v1124_v17 = vld [vmem:[%s1474_s1 + $0xe0] sm:$0xff]   ;;  %v1128_v22 = vld [vmem:[%s1474_s1 + $0xe8] sm:$0xff]  }
   0x7   :  { %v1121_v14 = vld [vmem:[%s1474_s1 + $0x18] sm:$0xff]   ;;  %v1125_v18 = vld [vmem:[%s1474_s1 + $0x20] sm:$0xff]   ;;  %v1129_v23 = vld [vmem:[%s1474_s1 + $0x28] sm:$0xff]  }
   0x8   :  { %v1122_v15 = vld [vmem:[%s1474_s1 + $0x98] sm:$0xff]   ;;  %v1126_v19 = vld [vmem:[%s1474_s1 + $0xa0] sm:$0xff]   ;;  %v1130_v24 = vld [vmem:[%s1474_s1 + $0xa8] sm:$0xff]  }
   0x9   :  { %v1283_v20 = vld [vmem:[%s1473_s0] sm:$0xff]   ;;  %v1131_v25 = vld [vmem:[%s1474_s1 + $0x70] sm:$0xff]   ;;  %v1135_v29 = vld [vmem:[%s1474_s1 + $0x78] sm:$0xff]  }
   0xa   :  { %1040 = vmatprep.mubr.bf16.mxu0 %v1283_v20  ;;  %1060 = vmatprep.mubr.bf16.mxu1 %v1283_v20  ;;  %v1132_v26 = vld [vmem:[%s1474_s1 + $0xf0] sm:$0xff]   ;;  %v1136_v30 = vld [vmem:[%s1474_s1 + $0xf8] sm:$0xff]   ;;  %v1140_v33 = vld [vmem:[%s1474_s1 + $0x140] sm:$0xff]  }
   0xb   :  { %v1133_v27 = vld [vmem:[%s1474_s1 + $0x30] sm:$0xff]   ;;  %v1137_v31 = vld [vmem:[%s1474_s1 + $0x38] sm:$0xff]   ;;  %v1141_v34 = vld [vmem:[%s1474_s1 + $0x1c0] sm:$0xff]  }
   0xc   :  { %1027 = vmatpush3.bf16.xpose.msra.mxu0 %v1113_v6  ;;  %v1134_v28 = vld [vmem:[%s1474_s1 + $0xb0] sm:$0xff]   ;;  %v1138_v32 = vld [vmem:[%s1474_s1 + $0xb8] sm:$0xff]   ;;  %v1142_v35 = vld [vmem:[%s1474_s1 + $0x100] sm:$0xff]  }
   0xd   :  { %1047 = vmatpush3.bf16.xpose.msra.mxu1 %v1114_v7  ;;  %1028 = vmatprep.subr.bf16.mxu0 %v1115_v8  ;;  %v1143_v36 = vld [vmem:[%s1474_s1 + $0x180] sm:$0xff]   ;;  %v1144_v37 = vld [vmem:[%s1474_s1 + $0x148] sm:$0xff]  }
   0xe   :  { %1048 = vmatprep.subr.bf16.mxu1 %v1116_v9  ;;  %v1145_v38 = vld [vmem:[%s1474_s1 + $0x1c8] sm:$0xff]  }
   0xf   :  { %v1344_v39 = vld [vmem:[%s1473_s0 + $0x8] sm:$0xff]  }
  0x14   :  { %1029 = vmatpush3.bf16.xpose.msra.mxu0 %v1117_v10 }
  0x15   :  { %1049 = vmatpush3.bf16.xpose.msra.mxu1 %v1118_v11  ;;  %1030 = vmatprep.subr.bf16.mxu0 %v1119_v12 }
  0x16   :  { %1050 = vmatprep.subr.bf16.mxu1 %v1120_v13 }
  0x1c   :  { %1031 = vmatpush3.bf16.xpose.msra.mxu0 %v1121_v14 }
  0x1d   :  { %1051 = vmatpush3.bf16.xpose.msra.mxu1 %v1122_v15  ;;  %1032 = vmatprep.subr.bf16.mxu0 %v1123_v16 }
  0x1e   :  { %1052 = vmatprep.subr.bf16.mxu1 %v1124_v17 }
  0x24   :  { %1033 = vmatpush3.bf16.xpose.msra.mxu0 %v1125_v18 }
  0x25   :  { %1053 = vmatpush3.bf16.xpose.msra.mxu1 %v1126_v19  ;;  %1034 = vmatprep.subr.bf16.mxu0 %v1127_v21 }
  0x26   :  { %1054 = vmatprep.subr.bf16.mxu1 %v1128_v22 }
  0x2c   :  { %1035 = vmatpush3.bf16.xpose.msra.mxu0 %v1129_v23 }
  0x2d   :  { %1055 = vmatpush3.bf16.xpose.msra.mxu1 %v1130_v24  ;;  %1036 = vmatprep.subr.bf16.mxu0 %v1131_v25 }
  0x2e   :  { %1056 = vmatprep.subr.bf16.mxu1 %v1132_v26 }
  0x34   :  { %1037 = vmatpush3.bf16.xpose.msra.mxu0 %v1133_v27 }
  0x35   :  { %1057 = vmatpush3.bf16.xpose.msra.mxu1 %v1134_v28  ;;  %1038 = vmatprep.subr.bf16.mxu0 %v1135_v29 }
  0x36   :  { %1058 = vmatprep.subr.bf16.mxu1 %v1136_v30 }
  0x3c   :  { %1039 = vmatpush3.bf16.xpose.msra.mxu0 %v1137_v31 }
  0x3d   :  { %1059 = vmatpush3.bf16.xpose.msra.mxu1 %v1138_v32  ;;  %1064 = vmatprep.subr.bf16.mxu0 %v1140_v33 }
  0x3e   :  { %1084 = vmatprep.subr.bf16.mxu1 %v1141_v34 }
  0x3f   :  { %8 = vsyncpa [#allocation3], 0  ;;  %v1146_v40 = vld [vmem:[%s1474_s1 + $0x108] sm:$0xff]   ;;  %v1148_v42 = vld [vmem:[%s1474_s1 + $0x150] sm:$0xff]   ;;  %v150_v2 = vlaneseq }
  0x40   :  { %v1147_v41 = vld [vmem:[%s1474_s1 + $0x188] sm:$0xff]   ;;  %v1149_v43 = vld [vmem:[%s1474_s1 + $0x1d0] sm:$0xff]   ;;  %v1152_v46 = vld [vmem:[%s1474_s1 + $0x158] sm:$0xff]  }
  0x41   :  { %v1150_v44 = vld [vmem:[%s1474_s1 + $0x110] sm:$0xff]   ;;  %v1153_v47 = vld [vmem:[%s1474_s1 + $0x1d8] sm:$0xff]   ;;  %v1156_v50 = vld [vmem:[%s1474_s1 + $0x160] sm:$0xff]   ;;  %v1438_v3 = vshrl.u32 %v150_v2, 7 }
  0x42   :  { %v1151_v45 = vld [vmem:[%s1474_s1 + $0x190] sm:$0xff]   ;;  %v1154_v48 = vld [vmem:[%s1474_s1 + $0x118] sm:$0xff]   ;;  %v1157_v51 = vld [vmem:[%s1474_s1 + $0x1e0] sm:$0xff]  }
  0x43   :  { %1041 = vmatmul.mubr.bf16.vlgmr.msra.gmra.mrb[0].mxu0 %v1283_v20  ;;  %v1155_v49 = vld [vmem:[%s1474_s1 + $0x198] sm:$0xff]   ;;  %v1158_v52 = vld [vmem:[%s1474_s1 + $0x120] sm:$0xff]   ;;  %v1160_v54 = vld [vmem:[%s1474_s1 + $0x168] sm:$0xff]   ;;  %v152_v4 = vsub.s32 0, %v1438_v3  ;;  %v160_v6 = vsub.s32 2, %v1438_v3  ;;  %v156_v7 = vsub.s32 1, %v1438_v3 }
  0x44   :  { %1061 = vmatmul.mubr.bf16.vlgmr.msra.gmra.mrb[0].mxu1 %v1283_v20  ;;  %1065 = vmatpush3.bf16.xpose.msra.mxu0 %v1142_v35  ;;  %v1159_v53 = vld [vmem:[%s1474_s1 + $0x1a0] sm:$0xff]   ;;  %v1161_v55 = vld [vmem:[%s1474_s1 + $0x1e8] sm:$0xff]   ;;  %v1164_v58 = vld [vmem:[%s1474_s1 + $0x170] sm:$0xff]   ;;  %v164_v8 = vsub.s32 3, %v1438_v3 }
  0x45   :  { %1085 = vmatpush3.bf16.xpose.msra.mxu1 %v1143_v36  ;;  %1066 = vmatprep.subr.bf16.mxu0 %v1144_v37  ;;  %v1162_v56 = vld [vmem:[%s1474_s1 + $0x128] sm:$0xff]   ;;  %v1165_v59 = vld [vmem:[%s1474_s1 + $0x1f0] sm:$0xff]   ;;  %v1169_v62 = vld [vmem:[%s1474_s1 + $0x178] sm:$0xff]  }
  0x46   :  { %1086 = vmatprep.subr.bf16.mxu1 %v1145_v38  ;;  %1042 = vmatprep.mubr.bf16.mxu0 %v1344_v39  ;;  %v1163_v57 = vld [vmem:[%s1474_s1 + $0x1a8] sm:$0xff]   ;;  %v1166_v60 = vld [vmem:[%s1474_s1 + $0x130] sm:$0xff]   ;;  %v1170_v63 = vld [vmem:[%s1474_s1 + $0x1f8] sm:$0xff]  }
  0x47   :  { %1062 = vmatprep.mubr.bf16.mxu1 %v1344_v39  ;;  %v1167_v61 = vld [vmem:[%s1474_s1 + $0x1b0] sm:$0xff]   ;;  %v1171_v0 = vld [vmem:[%s1474_s1 + $0x138] sm:$0xff]   ;;  %v1444_v5 = vld [vmem:[%s1475_s2] sm:$0xff]  ;;  %s1197_s2 = smov [#allocation2]  }
  0x48   :  { %v1172_v1 = vld [vmem:[%s1474_s1 + $0x1b8] sm:$0xff]   ;;  %v153_v9 = vrot.slane %v1444_v5, %v152_v4  ;;  %v161_v10 = vrot.slane %v1444_v5, %v160_v6  ;;  %v157_v11 = vrot.slane %v1444_v5, %v156_v7  ;;  %v165_v12 = vrot.slane %v1444_v5, %v164_v8  ;;  %s915_s8 = sshll.u32 %s1197_s2, 4  ;;  %s916_s8 = int_to_ptr.vmem [resolvable:$true] %s915_s8 }
  0x49   :  { %s1173_s9 = scalar_lea.vmem %s916_s8, 2048  ;;  %p1178_p1 = scmp.lt.s32.totalorder %s916_s8, %s916_s8 }
  0x4a   :  { %p1174_p0 = scmp.ne.s32.totalorder %s916_s8, %s1173_s9  ;;  %p1179_p2 = scmp.lt.s32.totalorder %s1173_s9, %s1173_s9 }
  0x4b   :  { %1043 = vmatmul.mubr.bf16.gmra.mrb[4].mxu0 %v1344_v39 }
  0x4c   :  { %1067 = vmatpush3.bf16.xpose.msra.mxu0 %v1146_v40  ;;  %1063 = vmatmul.mubr.bf16.gmra.mrb[4].mxu1 %v1344_v39  ;;  %p1180_p3 = por %p1179_p2, %p1178_p1 }
  0x4d   :  { %1087 = vmatpush3.bf16.xpose.msra.mxu1 %v1147_v41  ;;  %1068 = vmatprep.subr.bf16.mxu0 %v1148_v42 }
  0x4e   :  { %1088 = vmatprep.subr.bf16.mxu1 %v1149_v43  ;;  %1080 = vmatprep.mubr.bf16.mxu0 %v1283_v20  ;;  %p1181_p4 = pnand %p1180_p3, %p1174_p0 }
  0x4f   :  { %1100 = vmatprep.mubr.bf16.mxu1 %v1283_v20 }
  0x54   :  { %1069 = vmatpush3.bf16.xpose.msra.mxu0 %v1150_v44 }
  0x55   :  { %1089 = vmatpush3.bf16.xpose.msra.mxu1 %v1151_v45  ;;  %1070 = vmatprep.subr.bf16.mxu0 %v1152_v46 }
  0x56   :  { %1090 = vmatprep.subr.bf16.mxu1 %v1153_v47 }
  0x5c   :  { %1071 = vmatpush3.bf16.xpose.msra.mxu0 %v1154_v48 }
  0x5d   :  { %1091 = vmatpush3.bf16.xpose.msra.mxu1 %v1155_v49  ;;  %1072 = vmatprep.subr.bf16.mxu0 %v1156_v50 }
  0x5e   :  { %1092 = vmatprep.subr.bf16.mxu1 %v1157_v51 }
  0x64   :  { %1073 = vmatpush3.bf16.xpose.msra.mxu0 %v1158_v52 }
  0x65   :  { %1093 = vmatpush3.bf16.xpose.msra.mxu1 %v1159_v53  ;;  %1074 = vmatprep.subr.bf16.mxu0 %v1160_v54  ;;  %v168_v53 = vsub.s32 4, %v1438_v3  ;;  %v176_v54 = vsub.s32 6, %v1438_v3 }
  0x66   :  { %1094 = vmatprep.subr.bf16.mxu1 %v1161_v55  ;;  %v172_v55 = vsub.s32 5, %v1438_v3 }
  0x6c   :  { %1075 = vmatpush3.bf16.xpose.msra.mxu0 %v1162_v56  ;;  %v180_v56 = vsub.s32 7, %v1438_v3 }
  0x6d   :  { %1095 = vmatpush3.bf16.xpose.msra.mxu1 %v1163_v57  ;;  %1076 = vmatprep.subr.bf16.mxu0 %v1164_v58  ;;  %v169_v57 = vrot.slane %v1444_v5, %v168_v53  ;;  %v177_v58 = vrot.slane %v1444_v5, %v176_v54 }
  0x6e   :  { %1096 = vmatprep.subr.bf16.mxu1 %v1165_v59  ;;  %v173_v59 = vrot.slane %v1444_v5, %v172_v55 }
  0x74   :  { %1077 = vmatpush3.bf16.xpose.msra.mxu0 %v1166_v60  ;;  %v181_v60 = vrot.slane %v1444_v5, %v180_v56 }
  0x75   :  { %1097 = vmatpush3.bf16.xpose.msra.mxu1 %v1167_v61  ;;  %1078 = vmatprep.subr.bf16.mxu0 %v1169_v62 }
  0x76   :  { %1098 = vmatprep.subr.bf16.mxu1 %v1170_v63 }
  0x7c   :  { %1079 = vmatpush3.bf16.xpose.msra.mxu0 %v1171_v0 }
  0x7d   :  { %1099 = vmatpush3.bf16.xpose.msra.mxu1 %v1172_v1 }
  0x83   :  { %1081 = vmatmul.mubr.bf16.vlgmr.msra.gmra.mrb[8].mxu0 %v1283_v20 }
  0x84   :  { %1101 = vmatmul.mubr.bf16.vlgmr.msra.gmra.mrb[8].mxu1 %v1283_v20  ;;  %1082 = vmatprep.mubr.bf16.mxu0 %v1344_v39 }
  0x85   :  { %1102 = vmatprep.mubr.bf16.mxu1 %v1344_v39 }
  0x8b   :  { %1083 = vmatmul.mubr.bf16.gmra.mrb[12].mxu0 %v1344_v39 }
  0x8c   :  { %1103 = vmatmul.mubr.bf16.gmra.mrb[12].mxu1 %v1344_v39 }
 0x116   :  { %v620_v13 = vpop.f32.mrb[0].mxu0 }
 0x117   :  { %v621_v14 = vadd.f32 %v620_v13, %v153_v9  ;;  %v673_v15 = vpop.f32.mrb[0].mxu1  ;;  %v622_v16 = vpop.f32.mrb[1].mxu0 }
 0x118   :  { %v674_v17 = vadd.f32 %v673_v15, %v161_v10  ;;  %v623_v18 = vadd.f32 %v622_v16, %v157_v11  ;;  %v675_v19 = vpop.f32.mrb[1].mxu1  ;;  %v624_v20 = vpop.f32.mrb[2].mxu0 }
 0x119   :  { %v676_v21 = vadd.f32 %v675_v19, %v165_v12  ;;  %v625_v22 = vadd.f32 %v624_v20, %v153_v9  ;;  %v677_v23 = vpop.f32.mrb[2].mxu1  ;;  %v626_v24 = vpop.f32.mrb[3].mxu0 }
 0x11a   :  { %v1008_v25 = vpack.c.bf16 %v623_v18, %v621_v14  ;;  %v678_v26 = vadd.f32 %v677_v23, %v161_v10  ;;  %v627_v27 = vadd.f32 %v626_v24, %v157_v11  ;;  %v679_v28 = vpop.f32.mrb[3].mxu1 }
 0x11b   :  { %v1009_v29 = vpack.c.bf16 %v676_v21, %v674_v17  ;;  %v680_v30 = vadd.f32 %v679_v28, %v165_v12 }
 0x11c   :  { %894 = vst [vmem:[#allocation2] sm:$0xff] %v1008_v25  ;;  %v1012_v31 = vpack.c.bf16 %v627_v27, %v625_v22 }
 0x11d   :  { %895 = vst [vmem:[#allocation2 + $0x8] sm:$0xff] %v1009_v29  ;;  %v1013_v32 = vpack.c.bf16 %v680_v30, %v678_v26 }
 0x11e   :  { %898 = vst [vmem:[#allocation2 + $0x20] sm:$0xff] %v1012_v31  ;;  %v630_v33 = vpop.f32.mrb[4].mxu0 }
 0x11f   :  { %899 = vst [vmem:[#allocation2 + $0x28] sm:$0xff] %v1013_v32  ;;  %v631_v34 = vadd.f32 %v630_v33, %v153_v9  ;;  %v683_v35 = vpop.f32.mrb[4].mxu1  ;;  %v632_v36 = vpop.f32.mrb[5].mxu0 }
 0x120   :  { %v684_v37 = vadd.f32 %v683_v35, %v161_v10  ;;  %v633_v38 = vadd.f32 %v632_v36, %v157_v11  ;;  %v685_v39 = vpop.f32.mrb[5].mxu1  ;;  %v634_v40 = vpop.f32.mrb[6].mxu0 }
 0x121   :  { %v686_v41 = vadd.f32 %v685_v39, %v165_v12  ;;  %v635_v42 = vadd.f32 %v634_v40, %v153_v9  ;;  %v687_v43 = vpop.f32.mrb[6].mxu1  ;;  %v636_v44 = vpop.f32.mrb[7].mxu0 }
 0x122   :  { %v1016_v45 = vpack.c.bf16 %v633_v38, %v631_v34  ;;  %v688_v46 = vadd.f32 %v687_v43, %v161_v10  ;;  %v637_v47 = vadd.f32 %v636_v44, %v157_v11  ;;  %v689_v48 = vpop.f32.mrb[7].mxu1 }
 0x123   :  { %v1017_v49 = vpack.c.bf16 %v686_v41, %v684_v37  ;;  %v690_v50 = vadd.f32 %v689_v48, %v165_v12 }
 0x124   :  { %902 = vst [vmem:[#allocation2 + $0x40] sm:$0xff] %v1016_v45  ;;  %v1020_v51 = vpack.c.bf16 %v637_v47, %v635_v42 }
 0x125   :  { %903 = vst [vmem:[#allocation2 + $0x48] sm:$0xff] %v1017_v49  ;;  %v1021_v52 = vpack.c.bf16 %v690_v50, %v688_v46 }
 0x126   :  { %906 = vst [vmem:[#allocation2 + $0x60] sm:$0xff] %v1020_v51 }
 0x127   :  { %907 = vst [vmem:[#allocation2 + $0x68] sm:$0xff] %v1021_v52 }
 0x156   :  { %v726_v61 = vpop.f32.mrb[8].mxu0 }
 0x157   :  { %v727_v62 = vadd.f32 %v726_v61, %v169_v57  ;;  %v779_v63 = vpop.f32.mrb[8].mxu1  ;;  %v728_v0 = vpop.f32.mrb[9].mxu0 }
 0x158   :  { %v780_v1 = vadd.f32 %v779_v63, %v177_v58  ;;  %v729_v2 = vadd.f32 %v728_v0, %v173_v59  ;;  %v781_v4 = vpop.f32.mrb[9].mxu1  ;;  %v730_v6 = vpop.f32.mrb[10].mxu0 }
 0x159   :  { %v782_v7 = vadd.f32 %v781_v4, %v181_v60  ;;  %v731_v8 = vadd.f32 %v730_v6, %v169_v57  ;;  %v783_v9 = vpop.f32.mrb[10].mxu1  ;;  %v732_v3 = vpop.f32.mrb[11].mxu0 }
 0x15a   :  { %v1010_v10 = vpack.c.bf16 %v729_v2, %v727_v62  ;;  %v784_v11 = vadd.f32 %v783_v9, %v177_v58  ;;  %v733_v12 = vadd.f32 %v732_v3, %v173_v59  ;;  %v785_v13 = vpop.f32.mrb[11].mxu1 }
 0x15b   :  { %v1011_v14 = vpack.c.bf16 %v782_v7, %v780_v1  ;;  %v786_v15 = vadd.f32 %v785_v13, %v181_v60 }
 0x15c   :  { %896 = vst [vmem:[#allocation2 + $0x10] sm:$0xff] %v1010_v10  ;;  %v1014_v5 = vpack.c.bf16 %v733_v12, %v731_v8 }
 0x15d   :  { %897 = vst [vmem:[#allocation2 + $0x18] sm:$0xff] %v1011_v14  ;;  %v1015_v16 = vpack.c.bf16 %v786_v15, %v784_v11 }
 0x15e   :  { %900 = vst [vmem:[#allocation2 + $0x30] sm:$0xff] %v1014_v5  ;;  %v736_v17 = vpop.f32.mrb[12].mxu0 }
 0x15f   :  { %901 = vst [vmem:[#allocation2 + $0x38] sm:$0xff] %v1015_v16  ;;  %v737_v18 = vadd.f32 %v736_v17, %v169_v57  ;;  %v789_v19 = vpop.f32.mrb[12].mxu1  ;;  %v738_v20 = vpop.f32.mrb[13].mxu0 }
 0x160   :  { %v790_v21 = vadd.f32 %v789_v19, %v177_v58  ;;  %v739_v22 = vadd.f32 %v738_v20, %v173_v59  ;;  %v791_v23 = vpop.f32.mrb[13].mxu1  ;;  %v740_v24 = vpop.f32.mrb[14].mxu0 }
 0x161   :  { %v792_v25 = vadd.f32 %v791_v23, %v181_v60  ;;  %v741_v26 = vadd.f32 %v740_v24, %v169_v57  ;;  %v793_v27 = vpop.f32.mrb[14].mxu1  ;;  %v742_v28 = vpop.f32.mrb[15].mxu0 }
 0x162   :  { %v1018_v29 = vpack.c.bf16 %v739_v22, %v737_v18  ;;  %v794_v30 = vadd.f32 %v793_v27, %v177_v58  ;;  %v743_v31 = vadd.f32 %v742_v28, %v173_v59  ;;  %v795_v32 = vpop.f32.mrb[15].mxu1 }
 0x163   :  { %v1019_v33 = vpack.c.bf16 %v792_v25, %v790_v21  ;;  %v796_v34 = vadd.f32 %v795_v32, %v181_v60 }
 0x164   :  { %904 = vst [vmem:[#allocation2 + $0x50] sm:$0xff] %v1018_v29  ;;  %v1022_v35 = vpack.c.bf16 %v743_v31, %v741_v26 }
 0x165   :  { %905 = vst [vmem:[#allocation2 + $0x58] sm:$0xff] %v1019_v33  ;;  %v1023_v36 = vpack.c.bf16 %v796_v34, %v794_v30 }
 0x166   :  { %908 = vst [vmem:[#allocation2 + $0x70] sm:$0xff] %v1022_v35 }
 0x167   :  { %909 = vst [vmem:[#allocation2 + $0x78] sm:$0xff] %v1023_v36 }
 0x168   :  { %1184 = shalt.err (!%p1181_p4)
}
 0x169   :  { %s1185_s12 = scalar_lea.hbm %s1476_s3, 2048 }
 0x16a   :  { %p1186_p5 = scmp.ne.s32.totalorder %s1476_s3, %s1185_s12  ;;  %p1189_p6 = scmp.lt.u32.totalorder %s1185_s12, %s1476_s3 }
 0x16c   :  { %p1191_p7 = pnand %p1189_p6, %p1186_p5 }
 0x16e   :  { %1194 = shalt.err (!%p1191_p7)
}
 0x16f   :  { %s1198_s16 = smov 512   ;;  %s1199_s17 = smov 32  }
 0x170   :  { %921 = dma.vmem_to_hbm [thread:$0]  %s916_s8, 2048, %s1476_s3, [#allocation3], %s1198_s16, %s1198_s16, %s1199_s17  }
 0x171   :  { %1195 = dma.done.wait [#allocation3], 2048  }
 0x172   :  { %1196 = vsyncadd [#allocation3], 4294965248 }
 0x173   :  { %925 = vsyncpa [#allocation3], 1 }

// kernel: soweli_kule_forward.2
= control target key start
LH: loop header
LB: loop body
LE: loop exit
PB: predicated region body
PF: predicated region fallthrough
CT: control target
= control target key end

     0   :  { %s3777_s0 = inlined_call_operand.vmem [shape: f32[32,128], index: 0, kind: input, shape index: {}]   ;;  %s3778_s1 = inlined_call_operand.vmem [shape: f32[2,1,16], index: 1, kind: input, shape index: {}]   ;;  %s3779_s2 = inlined_call_operand.vmem [shape: f32[1,128], index: 2, kind: input, shape index: {}]   ;;  %s3780_s3 = inlined_call_operand.vmem [shape: f32[1,128], index: 3, kind: input, shape index: {}]   ;;  %s3781_s4 = inlined_call_operand.vmem [shape: bf16[128,256], index: 4, kind: input, shape index: {}]   ;;  %s3782_s5 = inlined_call_operand.vmem [shape: f32[1,256], index: 5, kind: input, shape index: {}]   ;;  %s3783_s6 = inlined_call_operand.vmem [shape: bf16[256,128], index: 6, kind: input, shape index: {}]   ;;  %s3784_s7 = inlined_call_operand.vmem [shape: f32[1,128], index: 7, kind: input, shape index: {}]   ;;  %s3785_s8 = inlined_call_operand.vmem [shape: f32[1,128], index: 8, kind: input, shape index: {}]   ;;  %s3786_s9 = inlined_call_operand.vmem [shape: f32[1,128], index: 9, kind: input, shape index: {}]   ;;  %s3787_s10 = inlined_call_operand.hbm [shape: bf16[128,128], index: 10, kind: input, shape index: {}]   ;;  %s3788_s11 = inlined_call_operand.vmem [shape: f32[1,128], index: 11, kind: input, shape index: {}]   ;;  %s3789_s12 = inlined_call_operand.hbm [shape: bf16[128,128], index: 12, kind: input, shape index: {}]   ;;  %s3790_s13 = inlined_call_operand.vmem [shape: f32[1,128], index: 13, kind: input, shape index: {}]   ;;  %s3791_s14 = inlined_call_operand.hbm [shape: bf16[128,128], index: 14, kind: input, shape index: {}]   ;;  %s3792_s15 = inlined_call_operand.vmem [shape: f32[1,128], index: 15, kind: input, shape index: {}]   ;;  %s3793_s16 = inlined_call_operand.hbm [shape: bf16[128,128], index: 16, kind: input, shape index: {}]   ;;  %s3794_s17 = inlined_call_operand.vmem [shape: f32[1,128], index: 17, kind: input, shape index: {}]   ;;  %s3795_s18 = inlined_call_operand.vmem [shape: f32[1,128], index: 18, kind: input, shape index: {}]   ;;  %s3796_s19 = inlined_call_operand.vmem [shape: f32[1,128], index: 19, kind: input, shape index: {}]   ;;  %s3797_s20 = inlined_call_operand.hbm [shape: bf16[128,256], index: 20, kind: input, shape index: {}]   ;;  %s3798_s21 = inlined_call_operand.vmem [shape: f32[1,256], index: 21, kind: input, shape index: {}]   ;;  %s3799_s22 = inlined_call_operand.hbm [shape: bf16[256,128], index: 22, kind: input, shape index: {}]   ;;  %s3800_s23 = inlined_call_operand.vmem [shape: f32[1,128], index: 23, kind: input, shape index: {}]   ;;  %s3801_s24 = inlined_call_operand.vmem [shape: f32[1,128], index: 24, kind: input, shape index: {}]   ;;  %s3802_s25 = inlined_call_operand.vmem [shape: f32[1,128], index: 25, kind: input, shape index: {}]   ;;  %s3803_s26 = inlined_call_operand.vmem [shape: bf16[32,128], index: 26, kind: output, shape index: {}]  }
   0x1   :  { %3812 = sst [smem:[#allocation17_spill]] %s3777_s0 }
   0x2   :  { %3813 = sst [smem:[#allocation18_spill]] %s3778_s1 }
   0x3   :  { %3814 = sst [smem:[#allocation19_spill]] %s3779_s2 }
   0x4   :  { %3815 = sst [smem:[#allocation20_spill]] %s3780_s3 }
   0x5   :  { %3816 = sst [smem:[#allocation21_spill]] %s3781_s4 }
   0x6   :  { %3817 = sst [smem:[#allocation22_spill]] %s3782_s5 }
   0x7   :  { %3818 = sst [smem:[#allocation23_spill]] %s3783_s6 }
   0x8   :  { %3819 = sst [smem:[#allocation24_spill]] %s3784_s7 }
   0x9   :  { %3820 = sst [smem:[#allocation25_spill]] %s3785_s8 }
   0xa   :  { %3821 = sst [smem:[#allocation26_spill]] %s3786_s9 }
   0xb   :  { %3822 = sst [smem:[#allocation27_spill]] %s3787_s10 }
   0xc   :  { %3823 = sst [smem:[#allocation28_spill]] %s3800_s23 }
   0xd   :  { %3824 = sst [smem:[#allocation29_spill]] %s3801_s24 }
   0xe   :  { %3825 = sst [smem:[#allocation30_spill]] %s3802_s25 }
   0xf   :  { %3826 = sst [smem:[#allocation31_spill]] %s3803_s26 }
  0x10   :  { %31 = vsyncpa [#allocation3], 0 }
  0x11   :  { %32 = vsyncpa [#allocation5], 0 }
  0x12   :  { %33 = vsyncpa [#allocation8], 0 }
  0x13   :  { %34 = vsyncpa [#allocation11], 0  ;;  %s3315_s27 = smov 0  }
  0x14 LB: > { %3827 = sst [smem:[#allocation16_spill]] %s3165_s27  ;;  %s3321_s3 = sadd.s32 4294967295, %s3165_s27   ;;  %s3165_s27 = sphi %s3315_s27, %s40_s27  }
  0x15   : > { %p2445_p0 = scmp.ge.s32.totalorder %s3165_s27, 1  ;;  %p627_p1 = scmp.lt.s32.totalorder %s3165_s27, 3 }
  0x16   : > { %p3808_p2 = scmp.eq.s32.totalorder %s3321_s3, 0  ;;  %s3167_s28 = smov [#allocation4]  }
  0x17   : > { %p3326_p3 = pnand %p2445_p0, %p627_p1  ;;  %s679_s8 = sshll.u32 %s3167_s28, 4  ;;  %s3330_s8 = int_to_ptr.vmem [resolvable:$true] %s679_s8 }
  0x18   : > { %s3168_s4 = smov [#allocation7]   ;;  %s3169_s9 = smov [#allocation2]  }
  0x19   : > { %s3828_s7 = scalar_select %p3326_p3, 1, 0 }
  0x1a   : > { %p2787_p4 = pneg %p3326_p3  ;;  %s711_s29 = sshll.u32 %s3168_s4, 4  ;;  %s3334_s29 = int_to_ptr.vmem [resolvable:$true] %s711_s29 }
  0x1b   : > { %s663_s30 = sshll.u32 %s3169_s9, 4  ;;  %s3170_s2 = smov [#allocation6]   ;;  %s3342_s30 = int_to_ptr.vmem [resolvable:$true] %s663_s30 }
  0x1c   : > { %p3338_p5 = pnand %p3808_p2, %p2787_p4  ;;  %s3344_s5 = sshll.u32 %s3170_s2, 4  ;;  %s696_s5 = int_to_ptr.vmem [resolvable:$true] %s3344_s5 }
  0x1d   : > { %s2975_s1 = scalar_lea.hbm %s3789_s12, 1024 }
  0x1e   : > { %p2976_p6 = scmp.ne.s32.totalorder %s3789_s12, %s2975_s1  ;;  %p3354_p7 = pneg %p3338_p5 }
  0x1f   : > { %p2982_p10 = scmp.lt.u32.totalorder %s2975_s1, %s3789_s12 }
  0x20   : > { %p2978_p8 = pnand %p3354_p7, %p2976_p6 }
  0x22   : > { %p2979_p9 = pneg %p2978_p8 }
  0x24   : > { %p2984_p11 = pnand %p2982_p10, %p2979_p9 }
  0x26   : > { %2987 = shalt.err (!%p2984_p11)
}
  0x27   : > { %s2988_s10 = scalar_lea.vmem %s3330_s8, 1024  ;;  %p2996_p1 = scmp.lt.s32.totalorder %s3330_s8, %s3330_s8 }
  0x28   : > { %p2989_p12 = scmp.ne.s32.totalorder %s3330_s8, %s2988_s10  ;;  %p2997_p4 = scmp.lt.s32.totalorder %s2988_s10, %s2988_s10 }
  0x2a   : > { %p2991_p13 = pnand %p2989_p12, %p3354_p7  ;;  %p2998_p6 = por %p2997_p4, %p2996_p1 }
  0x2c   : > { %p2992_p0 = pneg %p2991_p13 }
  0x2e   : > { %p2999_p8 = pnand %p2998_p6, %p2992_p0 }
  0x30   : > { %3002 = shalt.err (!%p2999_p8)
}
  0x31   : > { %s3810_s6 = smov 64   ;;  %s3811_s1 = smov 4  }
  0x32   : > { %2793 = dma.hbm_to_vmem [thread:$0]  (!%p3338_p5), %s3789_s12, 1024, %s3330_s8, [#allocation5], %s3810_s6, %s3810_s6, %s3811_s1  }
  0x33   : > { %s3003_s10 = scalar_lea.hbm %s3793_s16, 1024 }
  0x34   : > { %p3004_p9 = scmp.ne.s32.totalorder %s3793_s16, %s3003_s10  ;;  %p3010_p12 = scmp.lt.u32.totalorder %s3003_s10, %s3793_s16 }
  0x36   : > { %p3006_p10 = pnand %p3004_p9, %p3354_p7 }
  0x38   : > { %p3007_p11 = pneg %p3006_p10 }
  0x3a   : > { %p3012_p13 = pnand %p3010_p12, %p3007_p11 }
  0x3c   : > { %3015 = shalt.err (!%p3012_p13)
}
  0x3d   : > { %s3016_s8 = scalar_lea.vmem %s3334_s29, 1024  ;;  %p3024_p6 = scmp.lt.s32.totalorder %s3334_s29, %s3334_s29 }
  0x3e   : > { %p3017_p0 = scmp.ne.s32.totalorder %s3334_s29, %s3016_s8  ;;  %p3025_p8 = scmp.lt.s32.totalorder %s3016_s8, %s3016_s8 }
  0x40   : > { %p3019_p1 = pnand %p3017_p0, %p3354_p7  ;;  %p3026_p9 = por %p3025_p8, %p3024_p6 }
  0x42   : > { %p3020_p4 = pneg %p3019_p1 }
  0x44   : > { %p3027_p10 = pnand %p3026_p9, %p3020_p4 }
  0x46   : > { %3030 = shalt.err (!%p3027_p10)
}
  0x47   : > { %2799 = dma.hbm_to_vmem [thread:$0]  (!%p3338_p5), %s3793_s16, 1024, %s3334_s29, [#allocation8], %s3810_s6, %s3810_s6, %s3811_s1  }
  0x48   : > { %s3831_s28 = sld [smem:[#allocation27_spill]] }
  0x4e   : > { %s3031_s4 = scalar_lea.hbm %s3831_s28, 1024 }
  0x4f   : > { %p3032_p11 = scmp.ne.s32.totalorder %s3831_s28, %s3031_s4  ;;  %p3038_p0 = scmp.lt.u32.totalorder %s3031_s4, %s3831_s28 }
  0x51   : > { %p3034_p12 = pnand %p3032_p11, %p3354_p7 }
  0x53   : > { %p3035_p13 = pneg %p3034_p12 }
  0x55   : > { %p3040_p1 = pnand %p3038_p0, %p3035_p13 }
  0x57   : > { %3043 = shalt.err (!%p3040_p1)
}
  0x58   : > { %s3044_s29 = scalar_lea.vmem %s3342_s30, 1024  ;;  %p3052_p9 = scmp.lt.s32.totalorder %s3342_s30, %s3342_s30 }
  0x59   : > { %p3045_p4 = scmp.ne.s32.totalorder %s3342_s30, %s3044_s29  ;;  %p3053_p10 = scmp.lt.s32.totalorder %s3044_s29, %s3044_s29 }
  0x5b   : > { %p3047_p6 = pnand %p3045_p4, %p3354_p7  ;;  %p3054_p11 = por %p3053_p10, %p3052_p9 }
  0x5d   : > { %p3048_p8 = pneg %p3047_p6 }
  0x5f   : > { %p3055_p12 = pnand %p3054_p11, %p3048_p8 }
  0x61   : > { %3058 = shalt.err (!%p3055_p12)
}
  0x62   : > { %2790 = dma.hbm_to_vmem [thread:$0]  (!%p3338_p5), %s3831_s28, 1024, %s3342_s30, [#allocation3], %s3810_s6, %s3810_s6, %s3811_s1  }
  0x63   : > { %s3059_s4 = scalar_lea.hbm %s3791_s14, 1024 }
  0x64   : > { %p3060_p13 = scmp.ne.s32.totalorder %s3791_s14, %s3059_s4  ;;  %p3066_p4 = scmp.lt.u32.totalorder %s3059_s4, %s3791_s14 }
  0x66   : > { %p3062_p0 = pnand %p3060_p13, %p3354_p7 }
  0x68   : > { %p3063_p1 = pneg %p3062_p0 }
  0x6a   : > { %p3068_p6 = pnand %p3066_p4, %p3063_p1 }
  0x6c   : > { %3071 = shalt.err (!%p3068_p6)
}
  0x6d   : > { %s3072_s29 = scalar_lea.vmem %s696_s5, 1024  ;;  %p3080_p11 = scmp.lt.s32.totalorder %s696_s5, %s696_s5 }
  0x6e   : > { %p3073_p8 = scmp.ne.s32.totalorder %s696_s5, %s3072_s29  ;;  %p3081_p12 = scmp.lt.s32.totalorder %s3072_s29, %s3072_s29 }
  0x70   : > { %p3075_p9 = pnand %p3073_p8, %p3354_p7  ;;  %p3082_p2 = por %p3081_p12, %p3080_p11 }
  0x72   : > { %p3076_p10 = pneg %p3075_p9 }
  0x74   : > { %p3083_p3 = pnand %p3082_p2, %p3076_p10 }
  0x76   : > { %3086 = shalt.err (!%p3083_p3)
}
  0x77   : > { %2796 = dma.hbm_to_vmem [thread:$0]  (!%p3338_p5), %s3791_s14, 1024, %s696_s5, [#allocation5], %s3810_s6, %s3810_s6, %s3811_s1  }
  0x78   : > { %s3173_s24 = smov [#allocation9]   ;;  %s3087_s9 = scalar_lea.hbm %s3797_s20, 2048 }
  0x79   : > { %s733_s25 = sshll.u32 %s3173_s24, 4  ;;  %p3088_p2 = scmp.ne.s32.totalorder %s3797_s20, %s3087_s9  ;;  %s734_s25 = int_to_ptr.vmem [resolvable:$true] %s733_s25 }
  0x7a   : > { %p3094_p0 = scmp.lt.u32.totalorder %s3087_s9, %s3797_s20 }
  0x7b   : > { %p3090_p3 = pnand %p3088_p2, %p3354_p7 }
  0x7d   : > { %p3091_p13 = pneg %p3090_p3 }
  0x7f   : > { %p3096_p1 = pnand %p3094_p0, %p3091_p13 }
  0x81   : > { %3099 = shalt.err (!%p3096_p1)
}
  0x82   : > { %s3100_s5 = scalar_lea.vmem %s734_s25, 2048  ;;  %p3108_p9 = scmp.lt.s32.totalorder %s734_s25, %s734_s25 }
  0x83   : > { %p3101_p4 = scmp.ne.s32.totalorder %s734_s25, %s3100_s5  ;;  %p3109_p10 = scmp.lt.s32.totalorder %s3100_s5, %s3100_s5 }
  0x85   : > { %p3103_p6 = pnand %p3101_p4, %p3354_p7  ;;  %p3110_p11 = por %p3109_p10, %p3108_p9 }
  0x87   : > { %p3104_p8 = pneg %p3103_p6 }
  0x89   : > { %p3111_p12 = pnand %p3110_p11, %p3104_p8 }
  0x8b   : > { %3114 = shalt.err (!%p3111_p12)
}
  0x8c   : > { %s3174_s30 = smov 128   ;;  %s3175_s23 = smov 8  }
  0x8d   : > { %2802 = dma.hbm_to_vmem [thread:$0]  (!%p3338_p5), %s3797_s20, 2048, %s734_s25, [#allocation8], %s3174_s30, %s3174_s30, %s3175_s23  }
  0x8e   : > { %s3176_s4 = smov [#allocation10]   ;;  %s3115_s8 = scalar_lea.hbm %s3799_s22, 2048 }
  0x8f   : > { %s749_s9 = sshll.u32 %s3176_s4, 4  ;;  %p3116_p2 = scmp.ne.s32.totalorder %s3799_s22, %s3115_s8  ;;  %s750_s9 = int_to_ptr.vmem [resolvable:$true] %s749_s9 }
  0x90   : > { %p3122_p0 = scmp.lt.u32.totalorder %s3115_s8, %s3799_s22 }
  0x91   : > { %p3118_p3 = pnand %p3116_p2, %p3354_p7 }
  0x93   : > { %p3119_p13 = pneg %p3118_p3 }
  0x95   : > { %p3124_p1 = pnand %p3122_p0, %p3119_p13 }
  0x97   : > { %3127 = shalt.err (!%p3124_p1)
}
  0x98   : > { %s3128_s25 = scalar_lea.vmem %s750_s9, 2048  ;;  %p3136_p9 = scmp.lt.s32.totalorder %s750_s9, %s750_s9 }
  0x99   : > { %p3129_p4 = scmp.ne.s32.totalorder %s750_s9, %s3128_s25  ;;  %p3137_p10 = scmp.lt.s32.totalorder %s3128_s25, %s3128_s25 }
  0x9b   : > { %p3131_p6 = pnand %p3129_p4, %p3354_p7  ;;  %p3138_p11 = por %p3137_p10, %p3136_p9 }
  0x9d   : > { %p3132_p8 = pneg %p3131_p6 }
  0x9f   : > { %p3139_p12 = pnand %p3138_p11, %p3132_p8 }
  0xa1   : > { %3142 = shalt.err (!%p3139_p12)
}
  0xa2   : > { %s3832_s30 = smov 4   ;;  %s3833_s23 = smov 64  }
  0xa3   : > { %2805 = dma.hbm_to_vmem [thread:$0]  (!%p3338_p5), %s3799_s22, 2048, %s750_s9, [#allocation11], %s3833_s23, %s3833_s23, %s3832_s30  }
  0xa4   : > { %p3834_p2 = scmp.ne.s32.totalorder %s3828_s7, 0 }
  0xa5   : > { %p3835_p7 = scmp.eq.s32.totalorder (!%p3834_p2), %s3321_s3, 0 }
  0xa6   : > { %789 = sbr.rel (%p3834_p2) target bundleno = 3524 (0xdc4), region = 124 }
  0xad   : > { %3148 = dma.done.wait (%p3835_p7), [#allocation3], 1024   ;;  %p3836_p3 = pmov %p3835_p7 }
  0xaf   : > { %3150 = vsyncadd (%p3836_p3), [#allocation3], 4294966272  ;;  %p3837_p13 = pmov %p3836_p3 }
  0xb0   : > { %p3838_p0 = pmov %p3836_p3 }
  0xb1   : > { %3152 = dma.done.wait (%p3837_p13), [#allocation5], 2048  }
  0xb2   : > { %3154 = vsyncadd (%p3838_p0), [#allocation5], 4294965248  ;;  %p3839_p1 = pmov %p3838_p0 }
  0xb3   : > { %p3840_p5 = pmov %p3838_p0 }
  0xb4   : > { %3156 = dma.done.wait (%p3839_p1), [#allocation8], 3072  }
  0xb5   : > { %3158 = vsyncadd (%p3840_p5), [#allocation8], 4294964224  ;;  %p3841_p4 = pmov %p3838_p0 }
  0xb6   : > { %p3842_p6 = pmov %p3838_p0 }
  0xb7   : > { %3160 = dma.done.wait (%p3841_p4), [#allocation11], 2048  }
  0xb8   : > { %3162 = vsyncadd (%p3842_p6), [#allocation11], 4294965248  ;;  %s2460_s27 = sshll.u32 %s3321_s3, 1  ;;  %s3843_s26 = sld [smem:[#allocation17_spill]]  ;;  %v3177_v21 = vmov 0   ;;  %v993_v60 = vlaneseq  ;;  %vm3179_vm0 = vmmov 0  }
  0xb9   : > { %p883_p8 = scmp.lt.s32.totalorder %s2460_s27, 3  ;;  %s3844_s10 = sld [smem:[#allocation21_spill]]  ;;  %1115 = vmatprep.mubr.bf16.mxu0 %v3177_v21  ;;  %vm1709_vm1 = vcmask 130048  }
  0xba   : > { %s3845_s5 = sld [smem:[#allocation23_spill]]  ;;  %s3847_s2 = sld [smem:[#allocation20_spill]]  ;;  %v3637_v61 = vshrl.u32 %v993_v60, 7 }
  0xbb   : > { %s3859_s27 = smov (!%p883_p8, %s2460_s27), 3  ;;  %s3848_s9 = sld [smem:[#allocation22_spill]] }
  0xbc   : > { %s2461_s7 = sshll.u32 %s3859_s27, 3  ;;  %v995_v62 = vsub.s32 0, %v3637_v61  ;;  %s3849_s29 = sld [smem:[#allocation24_spill]] }
  0xbd   : > { %s3850_s23 = sld [smem:[#allocation25_spill]]  ;;  %p888_p9 = scmp.lt.s32.totalorder %s3321_s3, 1 }
  0xbe   : > { %s886_s4 = scalar_lea.vmem %s3843_s26, %s2461_s7  ;;  %s3846_s26 = sld [smem:[#allocation19_spill]] }
  0xbf   : > { %v3516_v0 = vld [vmem:[%s886_s4] sm:$0xff]  ;;  %v3518_v1 = vld [vmem:[%s886_s4 + $0x8] sm:$0xff]  ;;  %v2842_v4 = vld [vmem:[%s3844_s10 + $0x14] ss:$8 sps:$4 sm:$0xff]   ;;  %s3851_s7 = sld [smem:[#allocation26_spill]]  ;;  %s3861_s3 = smov (!%p888_p9, %s3321_s3), 1 }
  0xc0   : > { %952 = vadd.xlane.f32.xlu0 %v3516_v0  ;;  %v2839_v2 = vld [vmem:[%s3844_s10 + $0x4] ss:$8 sps:$4 sm:$0xff]   ;;  %v2841_v3 = vld [vmem:[%s3844_s10] ss:$8 sps:$4 sm:$0xff]   ;;  %v2844_v13 = vld [vmem:[%s3844_s10 + $0x10] ss:$8 sps:$4 sm:$0xff]  }
  0xc1   : > { %1083 = vmatprep.subr.bf16.mxu0 %v2839_v2  ;;  %v2845_v14 = vld [vmem:[%s3844_s10 + $0x24] ss:$8 sps:$4 sm:$0xff]   ;;  %v2847_v15 = vld [vmem:[%s3844_s10 + $0x20] ss:$8 sps:$4 sm:$0xff]   ;;  %v2848_v16 = vld [vmem:[%s3844_s10 + $0x34] ss:$8 sps:$4 sm:$0xff]  }
  0xc2   : > { %1084 = vmatpush1.bf16.msra.mxu0 %v2841_v3  ;;  %v2850_v17 = vld [vmem:[%s3844_s10 + $0x30] ss:$8 sps:$4 sm:$0xff]   ;;  %v2851_v18 = vld [vmem:[%s3844_s10 + $0x44] ss:$8 sps:$4 sm:$0xff]   ;;  %v2853_v19 = vld [vmem:[%s3844_s10 + $0x40] ss:$8 sps:$4 sm:$0xff]  }
  0xc3   : > { %1085 = vmatprep.subr.bf16.mxu0 %v2842_v4  ;;  %v2854_v20 = vld [vmem:[%s3844_s10 + $0x54] ss:$8 sps:$4 sm:$0xff]   ;;  %v2856_v22 = vld [vmem:[%s3844_s10 + $0x50] ss:$8 sps:$4 sm:$0xff]   ;;  %v2857_v23 = vld [vmem:[%s3844_s10 + $0x64] ss:$8 sps:$4 sm:$0xff]  }
  0xc4   : > { %954 = vadd.xlane.f32.xlu0 %v3518_v1  ;;  %v2859_v24 = vld [vmem:[%s3844_s10 + $0x60] ss:$8 sps:$4 sm:$0xff]   ;;  %v2860_v25 = vld [vmem:[%s3844_s10 + $0x74] ss:$8 sps:$4 sm:$0xff]   ;;  %v2862_v26 = vld [vmem:[%s3844_s10 + $0x70] ss:$8 sps:$4 sm:$0xff]  }
  0xc5   : > { %v2863_v27 = vld [vmem:[%s3845_s5 + $0x40] sm:$0xff]   ;;  %v2865_v29 = vld [vmem:[%s3845_s5 + $0x48] sm:$0xff]   ;;  %v2867_v31 = vld [vmem:[%s3845_s5 + $0x50] sm:$0xff]   ;;  %v999_v2 = vsub.s32 1, %v3637_v61  ;;  %s3852_s25 = sld [smem:[#allocation18_spill]]  ;;  %s2463_s6 = sshll.u32 %s3859_s27, 2 }
  0xc6   : > { %1086 = vmatpush1.bf16.msra.mxu0 %v2844_v13  ;;  %v2864_v28 = vld [vmem:[%s3845_s5] sm:$0xff]   ;;  %2587 = vmatprep.subr.bf16.mxu1 %v2863_v27  ;;  %v2866_v30 = vld [vmem:[%s3845_s5 + $0x8] sm:$0xff]   ;;  %v2868_v32 = vld [vmem:[%s3845_s5 + $0x10] sm:$0xff]   ;;  %s3856_s0 = sld [smem:[#allocation31_spill]] }
  0xc7   : > { %1087 = vmatprep.subr.bf16.mxu0 %v2845_v14  ;;  %2588 = vmatpush3.bf16.msra.mxu1 %v2864_v28  ;;  %v2869_v33 = vld [vmem:[%s3845_s5 + $0x58] sm:$0xff]   ;;  %v2871_v35 = vld [vmem:[%s3845_s5 + $0x60] sm:$0xff]   ;;  %v2873_v37 = vld [vmem:[%s3845_s5 + $0x68] sm:$0xff]  }
  0xc8   : > { %2589 = vmatprep.subr.bf16.mxu1 %v2865_v29  ;;  %v2870_v34 = vld [vmem:[%s3845_s5 + $0x18] sm:$0xff]   ;;  %v2872_v36 = vld [vmem:[%s3845_s5 + $0x20] sm:$0xff]   ;;  %v2874_v55 = vld [vmem:[%s3845_s5 + $0x28] sm:$0xff]  }
  0xc9   : > { %v2464_v46 = vld [vmem:[%s3846_s26] ss:$0 sm:$0xff]  ;;  %v2875_v56 = vld [vmem:[%s3845_s5 + $0x70] sm:$0xff]   ;;  %v2877_v58 = vld [vmem:[%s3845_s5 + $0x78] sm:$0xff]  }
  0xca   : > { %1088 = vmatpush1.bf16.msra.mxu0 %v2847_v15  ;;  %v2465_v50 = vld [vmem:[%s3847_s2] ss:$0 sm:$0xff]  ;;  %v2876_v57 = vld [vmem:[%s3845_s5 + $0x30] sm:$0xff]   ;;  %v2878_v59 = vld [vmem:[%s3845_s5 + $0x38] sm:$0xff]   ;;  %s3853_s2 = sld [smem:[#allocation28_spill]] }
  0xcb   : > { %1089 = vmatprep.subr.bf16.mxu0 %v2848_v16  ;;  %2590 = vmatpush3.bf16.msra.mxu1 %v2866_v30  ;;  %v918_v63 = vld [vmem:[%s3848_s9] sm:$0x3]  ;;  %s890_s30 = scalar_lea.vmem %s3852_s25, %s3861_s3  ;;  %s3854_s25 = sld [smem:[#allocation29_spill]] }
  0xcc   : > { %2591 = vmatprep.subr.bf16.mxu1 %v2867_v31  ;;  %v996_v3 = vrot.slane %v918_v63, %v995_v62  ;;  %v1000_v4 = vrot.slane %v918_v63, %v999_v2  ;;  %v2879_v31 = vld [vmem:[#allocation2] sm:$0xff]   ;;  %s895_s24 = scalar_lea.vmem %s3856_s0, %s2463_s6 }
  0xcd   : > { %v2499_v63 = vld [vmem:[%s3850_s23] ss:$0 sm:$0xff]  ;;  %s3855_s23 = sld [smem:[#allocation30_spill]] }
  0xce   : > { %1090 = vmatpush1.bf16.msra.mxu0 %v2850_v17 }
  0xcf   : > { %1091 = vmatprep.subr.bf16.mxu0 %v2851_v18  ;;  %2592 = vmatpush3.bf16.msra.mxu1 %v2868_v32  ;;  %v2880_v32 = vld [vmem:[#allocation4] sm:$0xff]  }
  0xd0   : > { %2593 = vmatprep.subr.bf16.mxu1 %v2869_v33  ;;  %v3178_v33 = vmov 0.0  }
  0xd2   : > { %1092 = vmatpush1.bf16.msra.mxu0 %v2853_v19 }
  0xd3   : > { %1093 = vmatprep.subr.bf16.mxu0 %v2854_v20  ;;  %2594 = vmatpush3.bf16.msra.mxu1 %v2870_v34  ;;  %v2881_v34 = vld [vmem:[#allocation2 + $0x8] sm:$0xff]  }
  0xd4   : > { %2595 = vmatprep.subr.bf16.mxu1 %v2871_v35  ;;  %v2882_v35 = vld [vmem:[#allocation4 + $0x8] sm:$0xff]  }
  0xd6   : > { %1094 = vmatpush1.bf16.msra.mxu0 %v2856_v22 }
  0xd7   : > { %1095 = vmatprep.subr.bf16.mxu0 %v2857_v23  ;;  %2596 = vmatpush3.bf16.msra.mxu1 %v2872_v36 }
  0xd8   : > { %2597 = vmatprep.subr.bf16.mxu1 %v2873_v37 }
  0xda   : > { %1096 = vmatpush1.bf16.msra.mxu0 %v2859_v24 }
  0xdb   : > { %1097 = vmatprep.subr.bf16.mxu0 %v2860_v25  ;;  %2598 = vmatpush3.bf16.msra.mxu1 %v2874_v55  ;;  %v2498_v25 = vld [vmem:[%s3849_s29] ss:$0 sm:$0xff] }
  0xdc   : > { %2599 = vmatprep.subr.bf16.mxu1 %v2875_v56 }
  0xde   : > { %1098 = vmatpush1.bf16.msra.mxu0 %v2862_v26 }
  0xdf   : > { %2600 = vmatpush3.bf16.msra.mxu1 %v2876_v57  ;;  %2671 = vmatprep.subr.bf16.mxu0 %v3178_v33 }
  0xe0   : > { %2601 = vmatprep.subr.bf16.mxu1 %v2877_v58 }
  0xe3   : > { %2602 = vmatpush3.bf16.msra.mxu1 %v2878_v59 }
  0xe4   : > { %2691 = vmatprep.subr.bf16.mxu1 %v3178_v33 }
 0x14d   : > { %v953_v5 = vpop.xlane.xlu0 %952 }
 0x14e   : > { %v957_v6 = vmul.f32 0.0078125, %v953_v5 }
 0x150   : > { %v3532_v7 = vsub.f32 %v3516_v0, %v957_v6 }
 0x151   : > { %v955_v8 = vpop.xlane.xlu0 %954 }
 0x152   : > { %v958_v9 = vmul.f32 0.0078125, %v955_v8  ;;  %v961_v10 = vmul.f32 %v3532_v7, %v3532_v7 }
 0x154   : > { %v3537_v11 = vsub.f32 %v3518_v1, %v958_v9  ;;  %963 = vadd.xlane.f32.xlu1 %v961_v10 }
 0x156   : > { %v962_v12 = vmul.f32 %v3537_v11, %v3537_v11 }
 0x158   : > { %965 = vadd.xlane.f32.xlu1 %v962_v12 }
 0x1e1   : > { %v964_v38 = vpop.xlane.xlu1 %963 }
 0x1e2   : > { %v967_v39 = vmul.f32 0.0078125, %v964_v38 }
 0x1e4   : > { %v969_v40 = vadd.f32 1e-05, %v967_v39 }
 0x1e5   : > { %v966_v41 = vpop.xlane.xlu1 %965 }
 0x1e6   : > { %2951 = vrsqrt.f32 %v969_v40  ;;  %v968_v42 = vmul.f32 0.0078125, %v966_v41 }
 0x1e8   : > { %v970_v43 = vadd.f32 1e-05, %v968_v42  ;;  %v2883_v42 = vld [vmem:[#allocation2 + $0x10] sm:$0xff]  }
 0x1ea   : > { %2953 = vrsqrt.f32 %v970_v43  ;;  %v2884_v43 = vld [vmem:[#allocation4 + $0x10] sm:$0xff]  }
 0x1f0   : > { %v2952_v44 = vpop.eup %2951 }
 0x1f1   : > { %v973_v45 = vmul.f32 %v2952_v44, %v3532_v7  ;;  %v2885_v44 = vld [vmem:[#allocation2 + $0x18] sm:$0xff]  }
 0x1f3   : > { %v981_v49 = vmul.f32 %v2464_v46, %v973_v45  ;;  %v2886_v45 = vld [vmem:[#allocation4 + $0x18] sm:$0xff]  }
 0x1f4   : > { %v2954_v47 = vpop.eup %2953 }
 0x1f5   : > { %v974_v48 = vmul.f32 %v2954_v47, %v3537_v11  ;;  %v989_v52 = vadd.f32 %v2465_v50, %v981_v49  ;;  %v2888_v47 = vld [vmem:[#allocation4 + $0x20] sm:$0xff]   ;;  %v2890_v49 = vld [vmem:[#allocation4 + $0x28] sm:$0xff]  }
 0x1f7   : > { %v982_v51 = vmul.f32 %v2464_v46, %v974_v48  ;;  %v2887_v46 = vld [vmem:[#allocation2 + $0x20] sm:$0xff]   ;;  %v2889_v48 = vld [vmem:[#allocation2 + $0x28] sm:$0xff]  }
 0x1f9   : > { %v990_v53 = vadd.f32 %v2465_v50, %v982_v51  ;;  %v2891_v50 = vld [vmem:[#allocation2 + $0x30] sm:$0xff]  }
 0x1fa   : > { %v2892_v51 = vld [vmem:[#allocation4 + $0x30] sm:$0xff]  }
 0x1fb   : > { %v991_v54 = vpack.c.bf16 %v990_v53, %v989_v52  ;;  %v2893_v52 = vld [vmem:[#allocation2 + $0x38] sm:$0xff]  }
 0x1fc   : > { %v2894_v53 = vld [vmem:[#allocation4 + $0x38] sm:$0xff]  }
 0x1fd   : > { %1116 = vmatmul.mubr.bf16.vlgmr.msra.gmra.mrb[0].mxu0 %v991_v54 }
 0x1fe   : > { %2672 = vmatpush3.bf16.msra.mxu0 %v2879_v31  ;;  %2687 = vmatprep.mubr.msk.bf16.mxu0 %vm3179_vm0, %v3178_v33 }
 0x1ff   : > { %2673 = vmatprep.subr.bf16.mxu0 %v3178_v33 }
 0x202   : > { %2674 = vmatpush3.bf16.msra.mxu0 %v2881_v34 }
 0x203   : > { %2675 = vmatprep.subr.bf16.mxu0 %v3178_v33 }
 0x206   : > { %2676 = vmatpush3.bf16.msra.mxu0 %v2883_v42 }
 0x207   : > { %2677 = vmatprep.subr.bf16.mxu0 %v3178_v33 }
 0x20a   : > { %2678 = vmatpush3.bf16.msra.mxu0 %v2885_v44 }
 0x20b   : > { %2679 = vmatprep.subr.bf16.mxu0 %v3178_v33 }
 0x20e   : > { %2680 = vmatpush3.bf16.msra.mxu0 %v2887_v46 }
 0x20f   : > { %2681 = vmatprep.subr.bf16.mxu0 %v3178_v33 }
 0x212   : > { %2682 = vmatpush3.bf16.msra.mxu0 %v2889_v48 }
 0x213   : > { %2683 = vmatprep.subr.bf16.mxu0 %v3178_v33 }
 0x216   : > { %2684 = vmatpush3.bf16.msra.mxu0 %v2891_v50 }
 0x217   : > { %2685 = vmatprep.subr.bf16.mxu0 %v3178_v33 }
 0x21a   : > { %2686 = vmatpush3.bf16.msra.mxu0 %v2893_v52 }
 0x21b   : > { %2711 = vmatprep.subr.bf16.mxu0 %v3178_v33 }
 0x2d0   : > { %v1117_v5 = vpop.f32.mrb[0].mxu0 }
 0x2d1   : > { %v1118_v6 = vadd.f32 %v1117_v5, %v996_v3  ;;  %v1119_v7 = vpop.f32.mrb[1].mxu0 }
 0x2d2   : > { %v1120_v8 = vadd.f32 %v1119_v7, %v1000_v4  ;;  %v1121_v9 = vpop.f32.mrb[2].mxu0  ;;  %v2500_v7 = vld [vmem:[%s3851_s7] ss:$0 sm:$0xff] }
 0x2d3   : > { %v1122_v10 = vadd.f32 %v1121_v9, %v996_v3  ;;  %v1123_v11 = vpop.f32.mrb[3].mxu0  ;;  %v1126_v13 = vmax.f32 %v1118_v6, 0.0 }
 0x2d4   : > { %v1124_v12 = vadd.f32 %v1123_v11, %v1000_v4  ;;  %v1127_v15 = vmax.f32 %v1120_v8, 0.0  ;;  %v2895_v11 = vld [vmem:[#allocation6] sm:$0xff]  }
 0x2d5   : > { %v1128_v14 = vmax.f32 %v1122_v10, 0.0 }
 0x2d6   : > { %v1129_v16 = vmax.f32 %v1124_v12, 0.0 }
 0x2d7   : > { %v1130_v17 = vpack.c.bf16 %v1128_v14, %v1126_v13  ;;  %v2896_v13 = vld [vmem:[#allocation6 + $0x8] sm:$0xff]   ;;  %v2897_v14 = vld [vmem:[#allocation6 + $0x10] sm:$0xff]  }
 0x2d8   : > { %v1131_v18 = vpack.c.bf16 %v1129_v16, %v1127_v15  ;;  %v2898_v15 = vld [vmem:[#allocation6 + $0x18] sm:$0xff]   ;;  %v2899_v16 = vld [vmem:[#allocation6 + $0x20] sm:$0xff]  }
 0x2da   : > { %1260 = vmatprep.mubr.bf16.mxu1 %v1131_v18  ;;  %v2901_v18 = vld [vmem:[#allocation6 + $0x30] sm:$0xff]  }
 0x2db   : > { %1261 = vmatmul.mubr.bf16.vlgmr.msra.gmra.mrb[0].mxu1 %v1130_v17  ;;  %v2900_v17 = vld [vmem:[#allocation6 + $0x28] sm:$0xff]  }
 0x2dc   : > { %2692 = vmatpush3.bf16.msra.mxu1 %v2880_v32  ;;  %2707 = vmatprep.mubr.msk.bf16.mxu1 %vm3179_vm0, %v3178_v33 }
 0x2dd   : > { %2693 = vmatprep.subr.bf16.mxu1 %v3178_v33 }
 0x2e0   : > { %2694 = vmatpush3.bf16.msra.mxu1 %v2882_v35 }
 0x2e1   : > { %2695 = vmatprep.subr.bf16.mxu1 %v3178_v33 }
 0x2e4   : > { %2696 = vmatpush3.bf16.msra.mxu1 %v2884_v43 }
 0x2e5   : > { %2697 = vmatprep.subr.bf16.mxu1 %v3178_v33 }
 0x2e8   : > { %2698 = vmatpush3.bf16.msra.mxu1 %v2886_v45 }
 0x2e9   : > { %2699 = vmatprep.subr.bf16.mxu1 %v3178_v33 }
 0x2ec   : > { %2700 = vmatpush3.bf16.msra.mxu1 %v2888_v47 }
 0x2ed   : > { %2701 = vmatprep.subr.bf16.mxu1 %v3178_v33 }
 0x2f0   : > { %2702 = vmatpush3.bf16.msra.mxu1 %v2890_v49 }
 0x2f1   : > { %2703 = vmatprep.subr.bf16.mxu1 %v3178_v33 }
 0x2f4   : > { %2704 = vmatpush3.bf16.msra.mxu1 %v2892_v51 }
 0x2f5   : > { %2705 = vmatprep.subr.bf16.mxu1 %v3178_v33 }
 0x2f8   : > { %2706 = vmatpush3.bf16.msra.mxu1 %v2894_v53 }
 0x2f9   : > { %2737 = vmatprep.subr.bf16.mxu1 %v3178_v33 }
 0x3ae   : > { %v2603_v19 = vpop.f32.mrb[0].mxu1 }
 0x3af   : > { %v2604_v20 = vpop.f32.mrb[1].mxu1 }
 0x3b0   : > { %v2605_v22 = vadd.f32 %v2604_v20, %v2603_v19  ;;  %v2606_v23 = vpop.f32.mrb[2].mxu1  ;;  %v2902_v19 = vld [vmem:[#allocation6 + $0x38] sm:$0xff]   ;;  %v2501_v20 = vld [vmem:[%s3788_s11] ss:$0 sm:$0xff] }
 0x3b1   : > { %v2607_v24 = vpop.f32.mrb[3].mxu1 }
 0x3b2   : > { %v1269_v26 = vadd.f32 %v2605_v22, %v3516_v0  ;;  %v2608_v27 = vadd.f32 %v2607_v24, %v2606_v23  ;;  %v2510_v23 = vld [vmem:[%s3790_s13] ss:$0 sm:$0xff] }
 0x3b4   : > { %v1270_v28 = vadd.f32 %v2608_v27, %v3518_v1  ;;  %v1277_v29 = vadd.f32 %v2498_v25, %v1269_v26 }
 0x3b6   : > { %1281 = vadd.xlane.f32.xlu0 %v1277_v29  ;;  %v1278_v30 = vadd.f32 %v2498_v25, %v1270_v28 }
 0x3b8   : > { %1283 = vadd.xlane.f32.xlu1 %v1278_v30 }
 0x443   : > { %v1282_v0 = vpop.xlane.xlu0 %1281 }
 0x444   : > { %v1285_v1 = vmul.f32 0.0078125, %v1282_v0 }
 0x445   : > { %v1284_v36 = vpop.xlane.xlu1 %1283 }
 0x446   : > { %v1287_v37 = vsub.f32 %v1277_v29, %v1285_v1  ;;  %v1286_v38 = vmul.f32 0.0078125, %v1284_v36 }
 0x448   : > { %v1288_v39 = vsub.f32 %v1278_v30, %v1286_v38  ;;  %v1289_v40 = vmul.f32 %v1287_v37, %v1287_v37  ;;  %v2519_v38 = vld [vmem:[%s3792_s15] ss:$0 sm:$0xff] }
 0x44a   : > { %1291 = vadd.xlane.f32.xlu0 %v1289_v40  ;;  %v1290_v41 = vmul.f32 %v1288_v39, %v1288_v39 }
 0x44c   : > { %1293 = vadd.xlane.f32.xlu1 %v1290_v41 }
 0x4d7   : > { %v1292_v54 = vpop.xlane.xlu0 %1291 }
 0x4d8   : > { %v1295_v55 = vmul.f32 0.0078125, %v1292_v54 }
 0x4d9   : > { %v1294_v56 = vpop.xlane.xlu1 %1293 }
 0x4da   : > { %v1297_v57 = vadd.f32 1e-05, %v1295_v55  ;;  %v1296_v58 = vmul.f32 0.0078125, %v1294_v56 }
 0x4dc   : > { %2955 = vrsqrt.f32 %v1297_v57  ;;  %v1298_v59 = vadd.f32 1e-05, %v1296_v58 }
 0x4de   : > { %2957 = vrsqrt.f32 %v1298_v59 }
 0x4e6   : > { %v2956_v60 = vpop.eup %2955 }
 0x4e7   : > { %v1301_v3 = vmul.f32 %v2956_v60, %v1287_v37 }
 0x4e8   : > { %v2958_v4 = vpop.eup %2957 }
 0x4e9   : > { %v1302_v5 = vmul.f32 %v2958_v4, %v1288_v39  ;;  %v1309_v6 = vmul.f32 %v2499_v63, %v1301_v3 }
 0x4eb   : > { %v1310_v8 = vmul.f32 %v2499_v63, %v1302_v5  ;;  %v1317_v9 = vadd.f32 %v2500_v7, %v1309_v6 }
 0x4ed   : > { %v1318_v10 = vadd.f32 %v2500_v7, %v1310_v8 }
 0x4ef   : > { %v1319_v12 = vpack.c.bf16 %v1318_v10, %v1317_v9 }
 0x4f1   : > { %2688 = vmatmul.mubr.bf16.vlgmr.msra.gmra.mrb[4].mxu0 %v1319_v12  ;;  %2708 = vmatmul.mubr.bf16.vlgmr.msra.gmra.mrb[4].mxu1 %v1319_v12 }
 0x4f2   : > { %2712 = vmatpush3.bf16.msra.mxu0 %v2895_v11  ;;  %2727 = vmatprep.mubr.msk.bf16.mxu0 %vm3179_vm0, %v3178_v33  ;;  %v2903_v11 = vld [vmem:[#allocation7] sm:$0xff]  }
 0x4f3   : > { %2713 = vmatprep.subr.bf16.mxu0 %v3178_v33  ;;  %2739 = vmatprep.mubr.msk.bf16.mxu1 %vm3179_vm0, %v3178_v33 }
 0x4f6   : > { %2714 = vmatpush3.bf16.msra.mxu0 %v2896_v13  ;;  %v2904_v13 = vld [vmem:[#allocation7 + $0x8] sm:$0xff]  }
 0x4f7   : > { %2715 = vmatprep.subr.bf16.mxu0 %v3178_v33 }
 0x4fa   : > { %2716 = vmatpush3.bf16.msra.mxu0 %v2897_v14  ;;  %v2905_v14 = vld [vmem:[#allocation7 + $0x10] sm:$0xff]  }
 0x4fb   : > { %2717 = vmatprep.subr.bf16.mxu0 %v3178_v33 }
 0x4fe   : > { %2718 = vmatpush3.bf16.msra.mxu0 %v2898_v15  ;;  %v2906_v15 = vld [vmem:[#allocation7 + $0x18] sm:$0xff]  }
 0x4ff   : > { %2719 = vmatprep.subr.bf16.mxu0 %v3178_v33 }
 0x502   : > { %2720 = vmatpush3.bf16.msra.mxu0 %v2899_v16  ;;  %v2907_v16 = vld [vmem:[#allocation7 + $0x20] sm:$0xff]  }
 0x503   : > { %2721 = vmatprep.subr.bf16.mxu0 %v3178_v33 }
 0x506   : > { %2722 = vmatpush3.bf16.msra.mxu0 %v2900_v17  ;;  %v2908_v17 = vld [vmem:[#allocation7 + $0x28] sm:$0xff]  }
 0x507   : > { %2723 = vmatprep.subr.bf16.mxu0 %v3178_v33 }
 0x50a   : > { %2724 = vmatpush3.bf16.msra.mxu0 %v2901_v18  ;;  %v2909_v18 = vld [vmem:[#allocation7 + $0x30] sm:$0xff]  }
 0x50b   : > { %2725 = vmatprep.subr.bf16.mxu0 %v3178_v33 }
 0x50e   : > { %2726 = vmatpush3.bf16.msra.mxu0 %v2902_v19  ;;  %v2910_v19 = vld [vmem:[#allocation7 + $0x38] sm:$0xff]  }
 0x50f   : > { %2731 = vmatprep.subr.bf16.mxu0 %v3178_v33 }
 0x511   : > { %2728 = vmatmul.mubr.bf16.vlgmr.msra.gmra.mrb[8].mxu0 %v1319_v12 }
 0x512   : > { %2733 = vmatprep.mubr.msk.bf16.mxu0 %vm3179_vm0, %v3178_v33 }
 0x5c4   : > { %v1425_v22 = vpop.f32.mrb[4].mxu0  ;;  %v1540_v24 = vpop.f32.mrb[4].mxu1 }
 0x5c5   : > { %v1426_v25 = vadd.f32 %v2501_v20, %v1425_v22  ;;  %v2689_v26 = vpop.f32.mrb[5].mxu0  ;;  %v2709_v27 = vpop.f32.mrb[5].mxu1  ;;  %v1541_v30 = vadd.f32 %v2510_v23, %v1540_v24 }
 0x5c6   : > { %v1428_v28 = vpop.f32.mrb[6].mxu0  ;;  %v1543_v29 = vpop.f32.mrb[6].mxu1  ;;  %v2530_v26 = vld [vmem:[%s3794_s17] ss:$0 sm:$0xff] }
 0x5c7   : > { %v1429_v31 = vadd.f32 %v2501_v20, %v1428_v28  ;;  %v1544_v32 = vadd.f32 %v2510_v23, %v1543_v29  ;;  %v2690_v34 = vpop.f32.mrb[7].mxu0  ;;  %v2710_v35 = vpop.f32.mrb[7].mxu1  ;;  %v1432_v0 = vmul.f32 0.088388346, %v1426_v25 }
 0x5c8   : > { %v2913_v34 = vld [vmem:[#allocation9 + $0x4] ss:$8 sps:$4 sm:$0xff]   ;;  %v2916_v35 = vld [vmem:[#allocation9 + $0x14] ss:$8 sps:$4 sm:$0xff]  }
 0x5c9   : > { %v1433_v1 = vmul.f32 0.088388346, %v1429_v31  ;;  %v1547_v36 = vpack.c.bf16 %v1544_v32, %v1541_v30  ;;  %v2911_v32 = vld [vmem:[#allocation9] ss:$8 sps:$4 sm:$0xff]  }
 0x5cb   : > { %v1434_v37 = vpack.c.bf16 %v1433_v1, %v1432_v0  ;;  %2732 = vmatpush3.bf16.xpose.msra.mxu0 %v1547_v36  ;;  %v2914_v0 = vld [vmem:[#allocation9 + $0x10] ss:$8 sps:$4 sm:$0xff]  }
 0x5cc   : > { %2072 = vmatprep.subr.bf16.mxu0 %v2913_v34 }
 0x5d2   : > { %2734 = vmatmul.mubr.bf16.vlgmr.msra.gmra.mrb[12].mxu0 %v1434_v37 }
 0x5d3   : > { %2104 = vmatprep.mubr.bf16.mxu0 %v3177_v21  ;;  %v2528_v21 = vld [vmem:[%s890_s30] ss:$0 sm:$0xff]  ;;  %2073 = vmatpush1.bf16.msra.mxu0 %v2911_v32 }
 0x5d4   : > { %2074 = vmatprep.subr.bf16.mxu0 %v2916_v35 }
 0x5d7   : > { %2075 = vmatpush1.bf16.msra.mxu0 %v2914_v0 }
 0x5e4   : > { %v1653_v39 = vpop.f32.mrb[8].mxu0 }
 0x5e5   : > { %v2729_v40 = vpop.f32.mrb[9].mxu0  ;;  %v1654_v42 = vadd.f32 %v2519_v38, %v1653_v39 }
 0x5e6   : > { %v1656_v41 = vpop.f32.mrb[10].mxu0 }
 0x5e7   : > { %v1657_v43 = vadd.f32 %v2519_v38, %v1656_v41  ;;  %v2730_v44 = vpop.f32.mrb[11].mxu0 }
 0x5e8   : > { %v2917_v44 = vld [vmem:[#allocation9 + $0x20] ss:$8 sps:$4 sm:$0xff]  }
 0x5e9   : > { %v1660_v45 = vpack.c.bf16 %v1657_v43, %v1654_v42  ;;  %v2919_v43 = vld [vmem:[#allocation9 + $0x24] ss:$8 sps:$4 sm:$0xff]  }
 0x5ea   : > { %2076 = vmatprep.subr.bf16.mxu0 %v2919_v43 }
 0x5eb   : > { %2738 = vmatpush3.bf16.msra.mxu1 %v1660_v45  ;;  %2077 = vmatpush1.bf16.msra.mxu0 %v2917_v44  ;;  %v2922_v45 = vld [vmem:[#allocation9 + $0x34] ss:$8 sps:$4 sm:$0xff]  }
 0x5ec   : > { %2743 = vmatprep.subr.bf16.mxu1 %v3178_v33  ;;  %2078 = vmatprep.subr.bf16.mxu0 %v2922_v45 }
 0x6a5   : > { %v1702_v46 = vpop.f32.mrb[12].mxu0 }
 0x6a6   : > { %v1703_v47 = vadd.f32 %v2528_v21, %v1702_v46  ;;  %v2735_v48 = vpop.f32.mrb[13].mxu0  ;;  %v2925_v46 = vld [vmem:[#allocation9 + $0x44] ss:$8 sps:$4 sm:$0xff]  }
 0x6a7   : > { %v1705_v49 = vpop.f32.mrb[14].mxu0  ;;  %v2928_v48 = vld [vmem:[#allocation9 + $0x54] ss:$8 sps:$4 sm:$0xff]  }
 0x6a8   : > { %v1706_v50 = vadd.f32 %v2528_v21, %v1705_v49  ;;  %v2736_v51 = vpop.f32.mrb[15].mxu0  ;;  %v1710_v52 = vsel %vm1709_vm1, %v1703_v47, -inf  ;;  %v2920_v21 = vld [vmem:[#allocation9 + $0x30] ss:$8 sps:$4 sm:$0xff]  }
 0x6a9   : > { %1711 = vmax.xlane.f32.xlu0 %v1710_v52  ;;  %2079 = vmatpush1.bf16.msra.mxu0 %v2920_v21  ;;  %v2926_v49 = vld [vmem:[#allocation9 + $0x50] ss:$8 sps:$4 sm:$0xff]   ;;  %v2929_v51 = vld [vmem:[#allocation9 + $0x60] ss:$8 sps:$4 sm:$0xff]   ;;  %v2934_v52 = vld [vmem:[#allocation9 + $0x74] ss:$8 sps:$4 sm:$0xff]  }
 0x6aa   : > { %v1713_v53 = vsel %vm1709_vm1, %v1706_v50, -inf  ;;  %2080 = vmatprep.subr.bf16.mxu0 %v2925_v46 }
 0x6ab   : > { %1714 = vmax.xlane.f32.xlu1 %v1713_v53  ;;  %v2932_v53 = vld [vmem:[#allocation9 + $0x70] ss:$8 sps:$4 sm:$0xff]  }
 0x736   : > { %v1712_v54 = vpop.xlane.xlu0 %1711 }
 0x737   : > { %v1716_v55 = vsub.f32 %v1703_v47, %v1712_v54  ;;  %v2923_v47 = vld [vmem:[#allocation9 + $0x40] ss:$8 sps:$4 sm:$0xff]  }
 0x738   : > { %v1715_v56 = vpop.xlane.xlu1 %1714  ;;  %2081 = vmatpush1.bf16.msra.mxu0 %v2923_v47  ;;  %v2935_v54 = vld [vmem:[#allocation10 + $0x40] sm:$0xff]  }
 0x739   : > { %v1718_v57 = vmul.f32 1.442695, %v1716_v55  ;;  %v1717_v58 = vsub.f32 %v1706_v50, %v1715_v56  ;;  %2082 = vmatprep.subr.bf16.mxu0 %v2928_v48  ;;  %v2931_v50 = vld [vmem:[#allocation9 + $0x64] ss:$8 sps:$4 sm:$0xff]   ;;  %v2573_v47 = vld [vmem:[%s3853_s2] ss:$0 sm:$0xff] }
 0x73a   : > { %v2936_v55 = vld [vmem:[#allocation10] sm:$0xff]   ;;  %v2937_v56 = vld [vmem:[#allocation10 + $0x48] sm:$0xff]  }
 0x73b   : > { %2959 = vpow2.f32 %v1718_v57  ;;  %v1720_v59 = vmul.f32 1.442695, %v1717_v58  ;;  %v2938_v57 = vld [vmem:[#allocation10 + $0x8] sm:$0xff]   ;;  %v2939_v58 = vld [vmem:[#allocation10 + $0x50] sm:$0xff]  }
 0x73c   : > { %2083 = vmatpush1.bf16.msra.mxu0 %v2926_v49 }
 0x73d   : > { %2961 = vpow2.f32 %v1720_v59  ;;  %2084 = vmatprep.subr.bf16.mxu0 %v2931_v50  ;;  %v2940_v59 = vld [vmem:[#allocation10 + $0x10] sm:$0xff]  }
 0x740   : > { %2085 = vmatpush1.bf16.msra.mxu0 %v2929_v51 }
 0x741   : > { %2086 = vmatprep.subr.bf16.mxu0 %v2934_v52 }
 0x744   : > { %2087 = vmatpush1.bf16.msra.mxu0 %v2932_v53 }
 0x745   : > { %v2960_v60 = vpop.eup %2959 }
 0x746   : > { %v1722_v63 = vsel %vm1709_vm1, %v2960_v60, 0.0 }
 0x747   : > { %v2962_v3 = vpop.eup %2961  ;;  %1723 = vadd.xlane.f32.xlu0 %v1722_v63  ;;  %v2942_v63 = vld [vmem:[#allocation10 + $0x18] sm:$0xff]  }
 0x748   : > { %v1725_v4 = vsel %vm1709_vm1, %v2962_v3, 0.0 }
 0x749   : > { %1726 = vadd.xlane.f32.xlu1 %v1725_v4  ;;  %v2944_v4 = vld [vmem:[#allocation10 + $0x20] sm:$0xff]  }
 0x7d4   : > { %v1724_v5 = vpop.xlane.xlu0 %1723 }
 0x7d5   : > { %2963 = vrcp.f32 %v1724_v5  ;;  %v2945_v5 = vld [vmem:[#allocation10 + $0x68] sm:$0xff]  }
 0x7d6   : > { %v1727_v6 = vpop.xlane.xlu1 %1726 }
 0x7d7   : > { %2965 = vrcp.f32 %v1727_v6 }
 0x7df   : > { %v2964_v7 = vpop.eup %2963 }
 0x7e0   : > { %v1730_v9 = vmul.f32 %v2964_v7, %v2960_v60  ;;  %v2941_v60 = vld [vmem:[#allocation10 + $0x58] sm:$0xff]  }
 0x7e1   : > { %v2966_v8 = vpop.eup %2965 }
 0x7e2   : > { %v1731_v10 = vmul.f32 %v2966_v8, %v2962_v3  ;;  %v2943_v3 = vld [vmem:[#allocation10 + $0x60] sm:$0xff]  }
 0x7e4   : > { %v1732_v12 = vpack.c.bf16 %v1731_v10, %v1730_v9 }
 0x7e6   : > { %2740 = vmatmul.mubr.msk.bf16.vlgmr.msra.gmra.mrb[8].mxu1 %vm1709_vm1, %v1732_v12 }
 0x7e7   : > { %2744 = vmatpush3.bf16.msra.mxu1 %v2903_v11  ;;  %2759 = vmatprep.mubr.msk.bf16.mxu1 %vm3179_vm0, %v3178_v33 }
 0x7e8   : > { %2745 = vmatprep.subr.bf16.mxu1 %v3178_v33 }
 0x7eb   : > { %2746 = vmatpush3.bf16.msra.mxu1 %v2904_v13  ;;  %v2539_v13 = vld [vmem:[%s3795_s18] ss:$0 sm:$0xff] }
 0x7ec   : > { %2747 = vmatprep.subr.bf16.mxu1 %v3178_v33 }
 0x7ef   : > { %2748 = vmatpush3.bf16.msra.mxu1 %v2905_v14 }
 0x7f0   : > { %2749 = vmatprep.subr.bf16.mxu1 %v3178_v33 }
 0x7f3   : > { %2750 = vmatpush3.bf16.msra.mxu1 %v2906_v15 }
 0x7f4   : > { %2751 = vmatprep.subr.bf16.mxu1 %v3178_v33 }
 0x7f7   : > { %2752 = vmatpush3.bf16.msra.mxu1 %v2907_v16 }
 0x7f8   : > { %2753 = vmatprep.subr.bf16.mxu1 %v3178_v33 }
 0x7fb   : > { %2754 = vmatpush3.bf16.msra.mxu1 %v2908_v17 }
 0x7fc   : > { %2755 = vmatprep.subr.bf16.mxu1 %v3178_v33 }
 0x7ff   : > { %2756 = vmatpush3.bf16.msra.mxu1 %v2909_v18  ;;  %v2540_v18 = vld [vmem:[%s3796_s19] ss:$0 sm:$0xff] }
 0x800   : > { %2757 = vmatprep.subr.bf16.mxu1 %v3178_v33 }
 0x803   : > { %2758 = vmatpush3.bf16.msra.mxu1 %v2910_v19 }
 0x804   : > { %2649 = vmatprep.subr.bf16.mxu1 %v2935_v54 }
 0x8b9   : > { %v1770_v20 = vpop.f32.mrb[8].mxu1 }
 0x8ba   : > { %v2741_v22 = vpop.f32.mrb[9].mxu1 }
 0x8bb   : > { %v1773_v23 = vpop.f32.mrb[10].mxu1 }
 0x8bc   : > { %v1777_v24 = vpack.c.bf16 %v1773_v23, %v1770_v20  ;;  %v2742_v25 = vpop.f32.mrb[11].mxu1 }
 0x8bd   : > { %v2947_v25 = vld [vmem:[#allocation10 + $0x70] sm:$0xff]  }
 0x8be   : > { %2760 = vmatmul.mubr.bf16.vlgmr.msra.gmra.mrb[12].mxu1 %v1777_v24  ;;  %v2946_v24 = vld [vmem:[#allocation10 + $0x28] sm:$0xff]  }
 0x8bf   : > { %2650 = vmatpush3.bf16.msra.mxu1 %v2936_v55 }
 0x8c0   : > { %2651 = vmatprep.subr.bf16.mxu1 %v2937_v56 }
 0x8c3   : > { %2652 = vmatpush3.bf16.msra.mxu1 %v2938_v57 }
 0x8c4   : > { %2653 = vmatprep.subr.bf16.mxu1 %v2939_v58 }
 0x8c7   : > { %2654 = vmatpush3.bf16.msra.mxu1 %v2940_v59 }
 0x8c8   : > { %2655 = vmatprep.subr.bf16.mxu1 %v2941_v60 }
 0x8cb   : > { %2656 = vmatpush3.bf16.msra.mxu1 %v2942_v63 }
 0x8cc   : > { %2657 = vmatprep.subr.bf16.mxu1 %v2943_v3 }
 0x8cf   : > { %2658 = vmatpush3.bf16.msra.mxu1 %v2944_v4 }
 0x8d0   : > { %2659 = vmatprep.subr.bf16.mxu1 %v2945_v5 }
 0x8d3   : > { %2660 = vmatpush3.bf16.msra.mxu1 %v2946_v24 }
 0x8d4   : > { %2661 = vmatprep.subr.bf16.mxu1 %v2947_v25 }
 0x991   : > { %v1883_v27 = vpop.f32.mrb[12].mxu1 }
 0x992   : > { %v3728_v28 = vadd.f32 %v2530_v26, %v1883_v27  ;;  %v2761_v29 = vpop.f32.mrb[13].mxu1  ;;  %v2949_v27 = vld [vmem:[#allocation10 + $0x78] sm:$0xff]  }
 0x993   : > { %v1886_v30 = vpop.f32.mrb[14].mxu1  ;;  %v2950_v29 = vld [vmem:[#allocation10 + $0x38] sm:$0xff]  }
 0x994   : > { %v3730_v31 = vadd.f32 %v2530_v26, %v1886_v30  ;;  %1942 = vadd.xlane.f32.xlu0 %v3728_v28  ;;  %v2762_v33 = vpop.f32.mrb[15].mxu1  ;;  %v2948_v26 = vld [vmem:[#allocation10 + $0x30] sm:$0xff]   ;;  %v1908_v30 = vld [vmem:[%s3798_s21] sm:$0x3] }
 0x995   : > { %2662 = vmatpush3.bf16.msra.mxu1 %v2948_v26  ;;  %v1985_v33 = vrot.slane %v1908_v30, %v995_v62  ;;  %v1989_v32 = vrot.slane %v1908_v30, %v999_v2 }
 0x996   : > { %1944 = vadd.xlane.f32.xlu1 %v3730_v31  ;;  %2663 = vmatprep.subr.bf16.mxu1 %v2949_v27 }
 0x999   : > { %2664 = vmatpush3.bf16.msra.mxu1 %v2950_v29 }
 0xa21   : > { %v1943_v1 = vpop.xlane.xlu0 %1942 }
 0xa22   : > { %v1946_v36 = vmul.f32 0.0078125, %v1943_v1 }
 0xa23   : > { %v1945_v37 = vpop.xlane.xlu1 %1944 }
 0xa24   : > { %v3735_v38 = vsub.f32 %v3728_v28, %v1946_v36  ;;  %v1947_v39 = vmul.f32 0.0078125, %v1945_v37 }
 0xa26   : > { %v3738_v40 = vsub.f32 %v3730_v31, %v1947_v39  ;;  %v1950_v41 = vmul.f32 %v3735_v38, %v3735_v38 }
 0xa28   : > { %1952 = vadd.xlane.f32.xlu0 %v1950_v41  ;;  %v1951_v42 = vmul.f32 %v3738_v40, %v3738_v40 }
 0xa2a   : > { %1954 = vadd.xlane.f32.xlu1 %v1951_v42 }
 0xab5   : > { %v1953_v6 = vpop.xlane.xlu0 %1952 }
 0xab6   : > { %v1956_v7 = vmul.f32 0.0078125, %v1953_v6 }
 0xab7   : > { %v1955_v8 = vpop.xlane.xlu1 %1954 }
 0xab8   : > { %v1958_v9 = vadd.f32 1e-05, %v1956_v7  ;;  %v1957_v10 = vmul.f32 0.0078125, %v1955_v8  ;;  %v2574_v7 = vld [vmem:[%s3854_s25] ss:$0 sm:$0xff] }
 0xaba   : > { %2967 = vrsqrt.f32 %v1958_v9  ;;  %v1959_v11 = vadd.f32 1e-05, %v1957_v10 }
 0xabc   : > { %2969 = vrsqrt.f32 %v1959_v11 }
 0xac4   : > { %v2968_v12 = vpop.eup %2967 }
 0xac5   : > { %v1962_v14 = vmul.f32 %v2968_v12, %v3735_v38  ;;  %v2575_v12 = vld [vmem:[%s3855_s23] ss:$0 sm:$0xff] }
 0xac6   : > { %v2970_v15 = vpop.eup %2969 }
 0xac7   : > { %v1963_v16 = vmul.f32 %v2970_v15, %v3738_v40  ;;  %v1970_v17 = vmul.f32 %v2539_v13, %v1962_v14 }
 0xac9   : > { %v1971_v19 = vmul.f32 %v2539_v13, %v1963_v16  ;;  %v1978_v20 = vadd.f32 %v2540_v18, %v1970_v17 }
 0xacb   : > { %v1979_v22 = vadd.f32 %v2540_v18, %v1971_v19 }
 0xacd   : > { %v1980_v23 = vpack.c.bf16 %v1979_v22, %v1978_v20 }
 0xacf   : > { %2105 = vmatmul.mubr.bf16.vlgmr.msra.gmra.mrb[16].mxu0 %v1980_v23 }
 0xba2   : > { %v2106_v34 = vpop.f32.mrb[16].mxu0 }
 0xba3   : > { %v2107_v35 = vadd.f32 %v2106_v34, %v1985_v33  ;;  %v2108_v0 = vpop.f32.mrb[17].mxu0 }
 0xba4   : > { %v2109_v1 = vadd.f32 %v2108_v0, %v1989_v32  ;;  %v2110_v36 = vpop.f32.mrb[18].mxu0 }
 0xba5   : > { %v2111_v37 = vadd.f32 %v2110_v36, %v1985_v33  ;;  %v2112_v38 = vpop.f32.mrb[19].mxu0  ;;  %v2115_v40 = vmax.f32 %v2107_v35, 0.0 }
 0xba6   : > { %v2113_v39 = vadd.f32 %v2112_v38, %v1989_v32  ;;  %v2116_v42 = vmax.f32 %v2109_v1, 0.0 }
 0xba7   : > { %v2117_v41 = vmax.f32 %v2111_v37, 0.0 }
 0xba8   : > { %v2118_v43 = vmax.f32 %v2113_v39, 0.0 }
 0xba9   : > { %v2119_v44 = vpack.c.bf16 %v2117_v41, %v2115_v40 }
 0xbaa   : > { %v2120_v45 = vpack.c.bf16 %v2118_v43, %v2116_v42 }
 0xbac   : > { %2249 = vmatprep.mubr.bf16.mxu1 %v2120_v45 }
 0xbad   : > { %2250 = vmatmul.mubr.bf16.vlgmr.msra.gmra.mrb[16].mxu1 %v2119_v44 }
 0xc80   : > { %v2665_v62 = vpop.f32.mrb[16].mxu1 }
 0xc81   : > { %v2666_v21 = vpop.f32.mrb[17].mxu1 }
 0xc82   : > { %v2667_v61 = vadd.f32 %v2666_v21, %v2665_v62  ;;  %v2668_v2 = vpop.f32.mrb[18].mxu1 }
 0xc83   : > { %v2669_v46 = vpop.f32.mrb[19].mxu1 }
 0xc84   : > { %v2258_v48 = vadd.f32 %v2667_v61, %v3728_v28  ;;  %v2670_v49 = vadd.f32 %v2669_v46, %v2668_v2 }
 0xc86   : > { %v2259_v50 = vadd.f32 %v2670_v49, %v3730_v31  ;;  %v2266_v51 = vadd.f32 %v2573_v47, %v2258_v48 }
 0xc88   : > { %2270 = vadd.xlane.f32.xlu0 %v2266_v51  ;;  %v2267_v52 = vadd.f32 %v2573_v47, %v2259_v50 }
 0xc8a   : > { %2272 = vadd.xlane.f32.xlu1 %v2267_v52 }
 0xd15   : > { %v2271_v53 = vpop.xlane.xlu0 %2270 }
 0xd16   : > { %v2274_v54 = vmul.f32 0.0078125, %v2271_v53 }
 0xd17   : > { %v2273_v55 = vpop.xlane.xlu1 %2272 }
 0xd18   : > { %v2276_v56 = vsub.f32 %v2266_v51, %v2274_v54  ;;  %v2275_v57 = vmul.f32 0.0078125, %v2273_v55 }
 0xd1a   : > { %v2277_v58 = vsub.f32 %v2267_v52, %v2275_v57  ;;  %v2278_v59 = vmul.f32 %v2276_v56, %v2276_v56 }
 0xd1c   : > { %2280 = vadd.xlane.f32.xlu0 %v2278_v59  ;;  %v2279_v60 = vmul.f32 %v2277_v58, %v2277_v58 }
 0xd1e   : > { %2282 = vadd.xlane.f32.xlu1 %v2279_v60 }
 0xda9   : > { %v2281_v63 = vpop.xlane.xlu0 %2280 }
 0xdaa   : > { %v2284_v28 = vmul.f32 0.0078125, %v2281_v63 }
 0xdab   : > { %v2283_v3 = vpop.xlane.xlu1 %2282 }
 0xdac   : > { %v2286_v4 = vadd.f32 1e-05, %v2284_v28  ;;  %v2285_v31 = vmul.f32 0.0078125, %v2283_v3 }
 0xdae   : > { %2971 = vrsqrt.f32 %v2286_v4  ;;  %v2287_v5 = vadd.f32 1e-05, %v2285_v31 }
 0xdb0   : > { %2973 = vrsqrt.f32 %v2287_v5 }
 0xdb8   : > { %v2972_v6 = vpop.eup %2971 }
 0xdb9   : > { %v2290_v8 = vmul.f32 %v2972_v6, %v2276_v56 }
 0xdba   : > { %v2974_v9 = vpop.eup %2973 }
 0xdbb   : > { %v2298_v10 = vmul.f32 %v2574_v7, %v2290_v8  ;;  %v2291_v11 = vmul.f32 %v2974_v9, %v2277_v58 }
 0xdbd   : > { %v2299_v13 = vmul.f32 %v2574_v7, %v2291_v11  ;;  %v2306_v14 = vadd.f32 %v2575_v12, %v2298_v10 }
 0xdbf   : > { %v2307_v15 = vadd.f32 %v2575_v12, %v2299_v13 }
 0xdc1   : > { %v2585_v16 = vpack.c.bf16 %v2307_v15, %v2306_v14 }
 0xdc3   : > { %2586 = vst [vmem:[%s895_s24] sm:$0xff] %v2585_v16  }
 0xdc4 PF: > { %s3857_s26 = sld [smem:[#allocation16_spill]] }
 0xdca   : > { %s40_s27 = sadd.s32 1, %s3857_s26  }
 0xdcb   : > { %p37_p10 = scmp.ge.s32.totalorder %s40_s27, 4  }
 0xdcd   :  { %39 = sbr.rel (!%p37_p10) target bundleno = 20 (0x14), region = 182 }
 0xdd4   :  { %2340 = vsyncpa [#allocation3], 1 }
 0xdd5   :  { %2342 = vsyncpa [#allocation3 + $0x1], 1 }
 0xdd6   :  { %2343 = vsyncpa [#allocation5], 1 }
 0xdd7   :  { %2344 = vsyncpa [#allocation8], 1 }
 0xdd8   :  { %2345 = vsyncpa [#allocation11], 1 }

</bundles_post_ra>
